<compile_context>
chip_gen: v7x
topology: tpu7x:2x2x1
jax: 0.10.0
libtpu: 0.0.40
codegen_flags: <defaults>
</compile_context>

<pallas_src>
import jax
import jax.numpy as jnp
from jax import lax
from jax.experimental import pallas as pl
from jax.experimental.pallas import tpu as pltpu

K = 3  # conv kernel size (3x3, padding=1)


def resblock_kernel(x_ref, w_ref, b_ref, o_ref, xpad_ref):
    """Whole batch in one invocation.

    x_ref:    (B, C, H, W)        input activations, NCHW, VMEM
    w_ref:    (C*C*K*K,)          conv2 weight, flat OIHW order, SMEM
    b_ref:    (C,)                conv2 bias, SMEM
    o_ref:    (B, C, H, W)        output, VMEM
    xpad_ref: (B, C, H+2, W+2)    zero-halo scratch, VMEM
    """
    B, C, H, W = x_ref.shape

    # Build the zero-padded view: clear the scratch once, then drop the batch
    # at offset (1, 1) so the 1-pixel ring around each image reads back zeros.
    xpad_ref[...] = jnp.zeros_like(xpad_ref)
    xpad_ref[:, :, 1:1 + H, 1:1 + W] = x_ref[...]

    # Direct conv: out[:, co] = sum_{ci,kh,kw} w[co,ci,kh,kw] * shifted input.
    # Scalar weights come from SMEM; shifted (B, H, W) slices are statically
    # indexed and reused across all output channels.
    accs = [jnp.zeros((B, H, W), dtype=jnp.float32) for _ in range(C)]
    for ci in range(C):
        for kh in range(K):
            for kw in range(K):
                tap = xpad_ref[:, ci, kh:kh + H, kw:kw + W]  # (B, H, W)
                for co in range(C):
                    w = w_ref[((co * C + ci) * K + kh) * K + kw]  # SMEM scalar
                    accs[co] = accs[co] + w * tap

    # bias + ReLU + residual (residual read directly from the input ref).
    for co in range(C):
        y = jnp.maximum(accs[co] + b_ref[co], 0.0) + x_ref[:, co, :, :]
        o_ref[:, co, :, :] = y.astype(o_ref.dtype)


def simple_residual_block(x_nchw, w2_oihw, b2):
    """Forward pass of SimpleResidualBlock. x_nchw: (B, C, H, W) float32."""
    B, C, H, W = x_nchw.shape
    Cout, Cin, KH, KW = w2_oihw.shape
    assert (Cout, Cin, KH, KW) == (C, C, K, K), "residual add needs Cin == Cout"

    x = x_nchw.astype(jnp.float32)
    w_flat = w2_oihw.astype(jnp.float32).reshape(-1)  # [co, ci, kh, kw] order
    b_flat = b2.astype(jnp.float32).reshape(-1)

    return pl.pallas_call(
        resblock_kernel,
        out_shape=jax.ShapeDtypeStruct((B, C, H, W), jnp.float32),
        in_specs=[
            pl.BlockSpec(memory_space=pltpu.MemorySpace.VMEM),   # activations
            pl.BlockSpec(memory_space=pltpu.MemorySpace.SMEM),   # weights
            pl.BlockSpec(memory_space=pltpu.MemorySpace.SMEM),   # bias
        ],
        out_specs=pl.BlockSpec(memory_space=pltpu.MemorySpace.VMEM),
        scratch_shapes=[
            pltpu.VMEM((B, C, H + 2, W + 2), jnp.float32),       # zero-halo pad
        ],
    )(x, w_flat, b_flat)


def _reference(x_nchw, w2_oihw, b2):
    """Pure-JAX reference of the PyTorch forward (ReLU(conv2(x)) + x)."""
    y = lax.conv_general_dilated(
        x_nchw, w2_oihw, window_strides=(1, 1), padding=((1, 1), (1, 1)),
        dimension_numbers=("NCHW", "OIHW", "NCHW"))
    y = y + b2.reshape(1, -1, 1, 1)
    return jnp.maximum(y, 0.0) + x_nchw


if __name__ == "__main__":
    # Small shapes consistent with the module: batch=2, channels=3, spatial=16.
    B, C, H, W = 2, 3, 16, 16
    key = jax.random.PRNGKey(0)
    kx, kw1, kb1, kw2, kb2 = jax.random.split(key, 5)

    x = jax.random.normal(kx, (B, C, H, W), dtype=jnp.float32)

    # Deterministic parameter init matching the module's shapes.  conv1 params
    # are dead code in the PyTorch forward (output overwritten); created only
    # for fidelity and immediately discarded.
    fan_in = C * K * K
    bound = 1.0 / (fan_in ** 0.5)
    w1 = jax.random.uniform(kw1, (C, C, K, K), jnp.float32, -bound, bound)
    b1 = jax.random.uniform(kb1, (C,), jnp.float32, -bound, bound)
    w2 = jax.random.uniform(kw2, (C, C, K, K), jnp.float32, -bound, bound)
    b2 = jax.random.uniform(kb2, (C,), jnp.float32, -bound, bound)
    del w1, b1  # unused, mirrors the PyTorch forward semantics

    out = jax.block_until_ready(simple_residual_block(x, w2, b2))

    ref = _reference(x, w2, b2)
    assert out.shape == (B, C, H, W)
    assert jnp.allclose(out, ref, atol=1e-4, rtol=1e-4), "mismatch vs reference"

    print("KERNEL_OK")
</pallas_src>

<mosaic_0001>
module attributes {stable_mosaic.version = 11 : i64} {
  func.func @resblock_kernel(%arg0: memref<2x3x16x16xf32, #tpu.memory_space<vmem>>, %arg1: memref<81xf32, #tpu.memory_space<smem>>, %arg2: memref<3xf32, #tpu.memory_space<smem>>, %arg3: memref<2x3x16x16xf32, #tpu.memory_space<vmem>>, %arg4: memref<2x3x18x18xf32, #tpu.memory_space<vmem>>) attributes {dimension_semantics = [], scalar_prefetch = 0 : i64, scratch_operands = 1 : i64, tpu.core_type = #tpu.core_type<tc>} {
    %cst = arith.constant 0.000000e+00 : f32
    %0 = vector.broadcast %cst : f32 to vector<2x3x18x18xf32>
    %c0 = arith.constant 0 : index
    %c0_0 = arith.constant 0 : index
    %c0_1 = arith.constant 0 : index
    %c0_2 = arith.constant 0 : index
    %1 = vector.load %arg4[%c0, %c0_0, %c0_1, %c0_2] : memref<2x3x18x18xf32, #tpu.memory_space<vmem>>, vector<2x3x18x18xf32>
    tpu.vector_store %arg4[%c0, %c0_0, %c0_1, %c0_2], %0 {strides = array<i32>} : memref<2x3x18x18xf32, #tpu.memory_space<vmem>>, vector<2x3x18x18xf32>,
    %c0_3 = arith.constant 0 : index
    %c0_4 = arith.constant 0 : index
    %c0_5 = arith.constant 0 : index
    %c0_6 = arith.constant 0 : index
    %2 = vector.load %arg0[%c0_3, %c0_4, %c0_5, %c0_6] : memref<2x3x16x16xf32, #tpu.memory_space<vmem>>, vector<2x3x16x16xf32>
    %c0_7 = arith.constant 0 : index
    %c0_8 = arith.constant 0 : index
    %c1 = arith.constant 1 : index
    %c1_9 = arith.constant 1 : index
    %3 = vector.load %arg4[%c0_7, %c0_8, %c1, %c1_9] : memref<2x3x18x18xf32, #tpu.memory_space<vmem>>, vector<2x3x16x16xf32>
    tpu.vector_store %arg4[%c0_7, %c0_8, %c1, %c1_9], %2 {strides = array<i32>} : memref<2x3x18x18xf32, #tpu.memory_space<vmem>>, vector<2x3x16x16xf32>,
    %cst_10 = arith.constant 0.000000e+00 : f32
    %4 = vector.broadcast %cst_10 : f32 to vector<2x16x16xf32>
    %cst_11 = arith.constant 0.000000e+00 : f32
    %5 = vector.broadcast %cst_11 : f32 to vector<2x16x16xf32>
    %cst_12 = arith.constant 0.000000e+00 : f32
    %6 = vector.broadcast %cst_12 : f32 to vector<2x16x16xf32>
    %c0_13 = arith.constant 0 : index
    %c0_14 = arith.constant 0 : index
    %c0_15 = arith.constant 0 : index
    %c0_16 = arith.constant 0 : index
    %7 = vector.load %arg4[%c0_13, %c0_14, %c0_15, %c0_16] : memref<2x3x18x18xf32, #tpu.memory_space<vmem>>, vector<2x1x16x16xf32>
    %8 = vector.shape_cast %7 : vector<2x1x16x16xf32> to vector<2x16x16xf32>
    %c0_17 = arith.constant 0 : index
    %9 = memref.load %arg1[%c0_17] : memref<81xf32, #tpu.memory_space<smem>>
    %10 = vector.broadcast %9 : f32 to vector<2x16x16xf32>
    %11 = arith.mulf %10, %8 : vector<2x16x16xf32>
    %12 = arith.addf %4, %11 : vector<2x16x16xf32>
    %c27 = arith.constant 27 : index
    %13 = memref.load %arg1[%c27] : memref<81xf32, #tpu.memory_space<smem>>
    %14 = vector.broadcast %13 : f32 to vector<2x16x16xf32>
    %15 = arith.mulf %14, %8 : vector<2x16x16xf32>
    %16 = arith.addf %5, %15 : vector<2x16x16xf32>
    %c54 = arith.constant 54 : index
    %17 = memref.load %arg1[%c54] : memref<81xf32, #tpu.memory_space<smem>>
    %18 = vector.broadcast %17 : f32 to vector<2x16x16xf32>
    %19 = arith.mulf %18, %8 : vector<2x16x16xf32>
    %20 = arith.addf %6, %19 : vector<2x16x16xf32>
    %c0_18 = arith.constant 0 : index
    %c0_19 = arith.constant 0 : index
    %c0_20 = arith.constant 0 : index
    %c1_21 = arith.constant 1 : index
    %21 = vector.load %arg4[%c0_18, %c0_19, %c0_20, %c1_21] : memref<2x3x18x18xf32, #tpu.memory_space<vmem>>, vector<2x1x16x16xf32>
    %22 = vector.shape_cast %21 : vector<2x1x16x16xf32> to vector<2x16x16xf32>
    %c1_22 = arith.constant 1 : index
    %23 = memref.load %arg1[%c1_22] : memref<81xf32, #tpu.memory_space<smem>>
    %24 = vector.broadcast %23 : f32 to vector<2x16x16xf32>
    %25 = arith.mulf %24, %22 : vector<2x16x16xf32>
    %26 = arith.addf %12, %25 : vector<2x16x16xf32>
    %c28 = arith.constant 28 : index
    %27 = memref.load %arg1[%c28] : memref<81xf32, #tpu.memory_space<smem>>
    %28 = vector.broadcast %27 : f32 to vector<2x16x16xf32>
    %29 = arith.mulf %28, %22 : vector<2x16x16xf32>
    %30 = arith.addf %16, %29 : vector<2x16x16xf32>
    %c55 = arith.constant 55 : index
    %31 = memref.load %arg1[%c55] : memref<81xf32, #tpu.memory_space<smem>>
    %32 = vector.broadcast %31 : f32 to vector<2x16x16xf32>
    %33 = arith.mulf %32, %22 : vector<2x16x16xf32>
    %34 = arith.addf %20, %33 : vector<2x16x16xf32>
    %c0_23 = arith.constant 0 : index
    %c0_24 = arith.constant 0 : index
    %c0_25 = arith.constant 0 : index
    %c2 = arith.constant 2 : index
    %35 = vector.load %arg4[%c0_23, %c0_24, %c0_25, %c2] : memref<2x3x18x18xf32, #tpu.memory_space<vmem>>, vector<2x1x16x16xf32>
    %36 = vector.shape_cast %35 : vector<2x1x16x16xf32> to vector<2x16x16xf32>
    %c2_26 = arith.constant 2 : index
    %37 = memref.load %arg1[%c2_26] : memref<81xf32, #tpu.memory_space<smem>>
    %38 = vector.broadcast %37 : f32 to vector<2x16x16xf32>
    %39 = arith.mulf %38, %36 : vector<2x16x16xf32>
    %40 = arith.addf %26, %39 : vector<2x16x16xf32>
    %c29 = arith.constant 29 : index
    %41 = memref.load %arg1[%c29] : memref<81xf32, #tpu.memory_space<smem>>
    %42 = vector.broadcast %41 : f32 to vector<2x16x16xf32>
    %43 = arith.mulf %42, %36 : vector<2x16x16xf32>
    %44 = arith.addf %30, %43 : vector<2x16x16xf32>
    %c56 = arith.constant 56 : index
    %45 = memref.load %arg1[%c56] : memref<81xf32, #tpu.memory_space<smem>>
    %46 = vector.broadcast %45 : f32 to vector<2x16x16xf32>
    %47 = arith.mulf %46, %36 : vector<2x16x16xf32>
    %48 = arith.addf %34, %47 : vector<2x16x16xf32>
    %c0_27 = arith.constant 0 : index
    %c0_28 = arith.constant 0 : index
    %c1_29 = arith.constant 1 : index
    %c0_30 = arith.constant 0 : index
    %49 = vector.load %arg4[%c0_27, %c0_28, %c1_29, %c0_30] : memref<2x3x18x18xf32, #tpu.memory_space<vmem>>, vector<2x1x16x16xf32>
    %50 = vector.shape_cast %49 : vector<2x1x16x16xf32> to vector<2x16x16xf32>
    %c3 = arith.constant 3 : index
    %51 = memref.load %arg1[%c3] : memref<81xf32, #tpu.memory_space<smem>>
    %52 = vector.broadcast %51 : f32 to vector<2x16x16xf32>
    %53 = arith.mulf %52, %50 : vector<2x16x16xf32>
    %54 = arith.addf %40, %53 : vector<2x16x16xf32>
    %c30 = arith.constant 30 : index
    %55 = memref.load %arg1[%c30] : memref<81xf32, #tpu.memory_space<smem>>
    %56 = vector.broadcast %55 : f32 to vector<2x16x16xf32>
    %57 = arith.mulf %56, %50 : vector<2x16x16xf32>
    %58 = arith.addf %44, %57 : vector<2x16x16xf32>
    %c57 = arith.constant 57 : index
    %59 = memref.load %arg1[%c57] : memref<81xf32, #tpu.memory_space<smem>>
    %60 = vector.broadcast %59 : f32 to vector<2x16x16xf32>
    %61 = arith.mulf %60, %50 : vector<2x16x16xf32>
    %62 = arith.addf %48, %61 : vector<2x16x16xf32>
    %c0_31 = arith.constant 0 : index
    %c0_32 = arith.constant 0 : index
    %c1_33 = arith.constant 1 : index
    %c1_34 = arith.constant 1 : index
    %63 = vector.load %arg4[%c0_31, %c0_32, %c1_33, %c1_34] : memref<2x3x18x18xf32, #tpu.memory_space<vmem>>, vector<2x1x16x16xf32>
    %64 = vector.shape_cast %63 : vector<2x1x16x16xf32> to vector<2x16x16xf32>
    %c4 = arith.constant 4 : index
    %65 = memref.load %arg1[%c4] : memref<81xf32, #tpu.memory_space<smem>>
    %66 = vector.broadcast %65 : f32 to vector<2x16x16xf32>
    %67 = arith.mulf %66, %64 : vector<2x16x16xf32>
    %68 = arith.addf %54, %67 : vector<2x16x16xf32>
    %c31 = arith.constant 31 : index
    %69 = memref.load %arg1[%c31] : memref<81xf32, #tpu.memory_space<smem>>
    %70 = vector.broadcast %69 : f32 to vector<2x16x16xf32>
    %71 = arith.mulf %70, %64 : vector<2x16x16xf32>
    %72 = arith.addf %58, %71 : vector<2x16x16xf32>
    %c58 = arith.constant 58 : index
    %73 = memref.load %arg1[%c58] : memref<81xf32, #tpu.memory_space<smem>>
    %74 = vector.broadcast %73 : f32 to vector<2x16x16xf32>
    %75 = arith.mulf %74, %64 : vector<2x16x16xf32>
    %76 = arith.addf %62, %75 : vector<2x16x16xf32>
    %c0_35 = arith.constant 0 : index
    %c0_36 = arith.constant 0 : index
    %c1_37 = arith.constant 1 : index
    %c2_38 = arith.constant 2 : index
    %77 = vector.load %arg4[%c0_35, %c0_36, %c1_37, %c2_38] : memref<2x3x18x18xf32, #tpu.memory_space<vmem>>, vector<2x1x16x16xf32>
    %78 = vector.shape_cast %77 : vector<2x1x16x16xf32> to vector<2x16x16xf32>
    %c5 = arith.constant 5 : index
    %79 = memref.load %arg1[%c5] : memref<81xf32, #tpu.memory_space<smem>>
    %80 = vector.broadcast %79 : f32 to vector<2x16x16xf32>
    %81 = arith.mulf %80, %78 : vector<2x16x16xf32>
    %82 = arith.addf %68, %81 : vector<2x16x16xf32>
    %c32 = arith.constant 32 : index
    %83 = memref.load %arg1[%c32] : memref<81xf32, #tpu.memory_space<smem>>
    %84 = vector.broadcast %83 : f32 to vector<2x16x16xf32>
    %85 = arith.mulf %84, %78 : vector<2x16x16xf32>
    %86 = arith.addf %72, %85 : vector<2x16x16xf32>
    %c59 = arith.constant 59 : index
    %87 = memref.load %arg1[%c59] : memref<81xf32, #tpu.memory_space<smem>>
    %88 = vector.broadcast %87 : f32 to vector<2x16x16xf32>
    %89 = arith.mulf %88, %78 : vector<2x16x16xf32>
    %90 = arith.addf %76, %89 : vector<2x16x16xf32>
    %c0_39 = arith.constant 0 : index
    %c0_40 = arith.constant 0 : index
    %c2_41 = arith.constant 2 : index
    %c0_42 = arith.constant 0 : index
    %91 = vector.load %arg4[%c0_39, %c0_40, %c2_41, %c0_42] : memref<2x3x18x18xf32, #tpu.memory_space<vmem>>, vector<2x1x16x16xf32>
    %92 = vector.shape_cast %91 : vector<2x1x16x16xf32> to vector<2x16x16xf32>
    %c6 = arith.constant 6 : index
    %93 = memref.load %arg1[%c6] : memref<81xf32, #tpu.memory_space<smem>>
    %94 = vector.broadcast %93 : f32 to vector<2x16x16xf32>
    %95 = arith.mulf %94, %92 : vector<2x16x16xf32>
    %96 = arith.addf %82, %95 : vector<2x16x16xf32>
    %c33 = arith.constant 33 : index
    %97 = memref.load %arg1[%c33] : memref<81xf32, #tpu.memory_space<smem>>
    %98 = vector.broadcast %97 : f32 to vector<2x16x16xf32>
    %99 = arith.mulf %98, %92 : vector<2x16x16xf32>
    %100 = arith.addf %86, %99 : vector<2x16x16xf32>
    %c60 = arith.constant 60 : index
    %101 = memref.load %arg1[%c60] : memref<81xf32, #tpu.memory_space<smem>>
    %102 = vector.broadcast %101 : f32 to vector<2x16x16xf32>
    %103 = arith.mulf %102, %92 : vector<2x16x16xf32>
    %104 = arith.addf %90, %103 : vector<2x16x16xf32>
    %c0_43 = arith.constant 0 : index
    %c0_44 = arith.constant 0 : index
    %c2_45 = arith.constant 2 : index
    %c1_46 = arith.constant 1 : index
    %105 = vector.load %arg4[%c0_43, %c0_44, %c2_45, %c1_46] : memref<2x3x18x18xf32, #tpu.memory_space<vmem>>, vector<2x1x16x16xf32>
    %106 = vector.shape_cast %105 : vector<2x1x16x16xf32> to vector<2x16x16xf32>
    %c7 = arith.constant 7 : index
    %107 = memref.load %arg1[%c7] : memref<81xf32, #tpu.memory_space<smem>>
    %108 = vector.broadcast %107 : f32 to vector<2x16x16xf32>
    %109 = arith.mulf %108, %106 : vector<2x16x16xf32>
    %110 = arith.addf %96, %109 : vector<2x16x16xf32>
    %c34 = arith.constant 34 : index
    %111 = memref.load %arg1[%c34] : memref<81xf32, #tpu.memory_space<smem>>
    %112 = vector.broadcast %111 : f32 to vector<2x16x16xf32>
    %113 = arith.mulf %112, %106 : vector<2x16x16xf32>
    %114 = arith.addf %100, %113 : vector<2x16x16xf32>
    %c61 = arith.constant 61 : index
    %115 = memref.load %arg1[%c61] : memref<81xf32, #tpu.memory_space<smem>>
    %116 = vector.broadcast %115 : f32 to vector<2x16x16xf32>
    %117 = arith.mulf %116, %106 : vector<2x16x16xf32>
    %118 = arith.addf %104, %117 : vector<2x16x16xf32>
    %c0_47 = arith.constant 0 : index
    %c0_48 = arith.constant 0 : index
    %c2_49 = arith.constant 2 : index
    %c2_50 = arith.constant 2 : index
    %119 = vector.load %arg4[%c0_47, %c0_48, %c2_49, %c2_50] : memref<2x3x18x18xf32, #tpu.memory_space<vmem>>, vector<2x1x16x16xf32>
    %120 = vector.shape_cast %119 : vector<2x1x16x16xf32> to vector<2x16x16xf32>
    %c8 = arith.constant 8 : index
    %121 = memref.load %arg1[%c8] : memref<81xf32, #tpu.memory_space<smem>>
    %122 = vector.broadcast %121 : f32 to vector<2x16x16xf32>
    %123 = arith.mulf %122, %120 : vector<2x16x16xf32>
    %124 = arith.addf %110, %123 : vector<2x16x16xf32>
    %c35 = arith.constant 35 : index
    %125 = memref.load %arg1[%c35] : memref<81xf32, #tpu.memory_space<smem>>
    %126 = vector.broadcast %125 : f32 to vector<2x16x16xf32>
    %127 = arith.mulf %126, %120 : vector<2x16x16xf32>
    %128 = arith.addf %114, %127 : vector<2x16x16xf32>
    %c62 = arith.constant 62 : index
    %129 = memref.load %arg1[%c62] : memref<81xf32, #tpu.memory_space<smem>>
    %130 = vector.broadcast %129 : f32 to vector<2x16x16xf32>
    %131 = arith.mulf %130, %120 : vector<2x16x16xf32>
    %132 = arith.addf %118, %131 : vector<2x16x16xf32>
    %c0_51 = arith.constant 0 : index
    %c1_52 = arith.constant 1 : index
    %c0_53 = arith.constant 0 : index
    %c0_54 = arith.constant 0 : index
    %133 = vector.load %arg4[%c0_51, %c1_52, %c0_53, %c0_54] : memref<2x3x18x18xf32, #tpu.memory_space<vmem>>, vector<2x1x16x16xf32>
    %134 = vector.shape_cast %133 : vector<2x1x16x16xf32> to vector<2x16x16xf32>
    %c9 = arith.constant 9 : index
    %135 = memref.load %arg1[%c9] : memref<81xf32, #tpu.memory_space<smem>>
    %136 = vector.broadcast %135 : f32 to vector<2x16x16xf32>
    %137 = arith.mulf %136, %134 : vector<2x16x16xf32>
    %138 = arith.addf %124, %137 : vector<2x16x16xf32>
    %c36 = arith.constant 36 : index
    %139 = memref.load %arg1[%c36] : memref<81xf32, #tpu.memory_space<smem>>
    %140 = vector.broadcast %139 : f32 to vector<2x16x16xf32>
    %141 = arith.mulf %140, %134 : vector<2x16x16xf32>
    %142 = arith.addf %128, %141 : vector<2x16x16xf32>
    %c63 = arith.constant 63 : index
    %143 = memref.load %arg1[%c63] : memref<81xf32, #tpu.memory_space<smem>>
    %144 = vector.broadcast %143 : f32 to vector<2x16x16xf32>
    %145 = arith.mulf %144, %134 : vector<2x16x16xf32>
    %146 = arith.addf %132, %145 : vector<2x16x16xf32>
    %c0_55 = arith.constant 0 : index
    %c1_56 = arith.constant 1 : index
    %c0_57 = arith.constant 0 : index
    %c1_58 = arith.constant 1 : index
    %147 = vector.load %arg4[%c0_55, %c1_56, %c0_57, %c1_58] : memref<2x3x18x18xf32, #tpu.memory_space<vmem>>, vector<2x1x16x16xf32>
    %148 = vector.shape_cast %147 : vector<2x1x16x16xf32> to vector<2x16x16xf32>
    %c10 = arith.constant 10 : index
    %149 = memref.load %arg1[%c10] : memref<81xf32, #tpu.memory_space<smem>>
    %150 = vector.broadcast %149 : f32 to vector<2x16x16xf32>
    %151 = arith.mulf %150, %148 : vector<2x16x16xf32>
    %152 = arith.addf %138, %151 : vector<2x16x16xf32>
    %c37 = arith.constant 37 : index
    %153 = memref.load %arg1[%c37] : memref<81xf32, #tpu.memory_space<smem>>
    %154 = vector.broadcast %153 : f32 to vector<2x16x16xf32>
    %155 = arith.mulf %154, %148 : vector<2x16x16xf32>
    %156 = arith.addf %142, %155 : vector<2x16x16xf32>
    %c64 = arith.constant 64 : index
    %157 = memref.load %arg1[%c64] : memref<81xf32, #tpu.memory_space<smem>>
    %158 = vector.broadcast %157 : f32 to vector<2x16x16xf32>
    %159 = arith.mulf %158, %148 : vector<2x16x16xf32>
    %160 = arith.addf %146, %159 : vector<2x16x16xf32>
    %c0_59 = arith.constant 0 : index
    %c1_60 = arith.constant 1 : index
    %c0_61 = arith.constant 0 : index
    %c2_62 = arith.constant 2 : index
    %161 = vector.load %arg4[%c0_59, %c1_60, %c0_61, %c2_62] : memref<2x3x18x18xf32, #tpu.memory_space<vmem>>, vector<2x1x16x16xf32>
    %162 = vector.shape_cast %161 : vector<2x1x16x16xf32> to vector<2x16x16xf32>
    %c11 = arith.constant 11 : index
    %163 = memref.load %arg1[%c11] : memref<81xf32, #tpu.memory_space<smem>>
    %164 = vector.broadcast %163 : f32 to vector<2x16x16xf32>
    %165 = arith.mulf %164, %162 : vector<2x16x16xf32>
    %166 = arith.addf %152, %165 : vector<2x16x16xf32>
    %c38 = arith.constant 38 : index
    %167 = memref.load %arg1[%c38] : memref<81xf32, #tpu.memory_space<smem>>
    %168 = vector.broadcast %167 : f32 to vector<2x16x16xf32>
    %169 = arith.mulf %168, %162 : vector<2x16x16xf32>
    %170 = arith.addf %156, %169 : vector<2x16x16xf32>
    %c65 = arith.constant 65 : index
    %171 = memref.load %arg1[%c65] : memref<81xf32, #tpu.memory_space<smem>>
    %172 = vector.broadcast %171 : f32 to vector<2x16x16xf32>
    %173 = arith.mulf %172, %162 : vector<2x16x16xf32>
    %174 = arith.addf %160, %173 : vector<2x16x16xf32>
    %c0_63 = arith.constant 0 : index
    %c1_64 = arith.constant 1 : index
    %c1_65 = arith.constant 1 : index
    %c0_66 = arith.constant 0 : index
    %175 = vector.load %arg4[%c0_63, %c1_64, %c1_65, %c0_66] : memref<2x3x18x18xf32, #tpu.memory_space<vmem>>, vector<2x1x16x16xf32>
    %176 = vector.shape_cast %175 : vector<2x1x16x16xf32> to vector<2x16x16xf32>
    %c12 = arith.constant 12 : index
    %177 = memref.load %arg1[%c12] : memref<81xf32, #tpu.memory_space<smem>>
    %178 = vector.broadcast %177 : f32 to vector<2x16x16xf32>
    %179 = arith.mulf %178, %176 : vector<2x16x16xf32>
    %180 = arith.addf %166, %179 : vector<2x16x16xf32>
    %c39 = arith.constant 39 : index
    %181 = memref.load %arg1[%c39] : memref<81xf32, #tpu.memory_space<smem>>
    %182 = vector.broadcast %181 : f32 to vector<2x16x16xf32>
    %183 = arith.mulf %182, %176 : vector<2x16x16xf32>
    %184 = arith.addf %170, %183 : vector<2x16x16xf32>
    %c66 = arith.constant 66 : index
    %185 = memref.load %arg1[%c66] : memref<81xf32, #tpu.memory_space<smem>>
    %186 = vector.broadcast %185 : f32 to vector<2x16x16xf32>
    %187 = arith.mulf %186, %176 : vector<2x16x16xf32>
    %188 = arith.addf %174, %187 : vector<2x16x16xf32>
    %c0_67 = arith.constant 0 : index
    %c1_68 = arith.constant 1 : index
    %c1_69 = arith.constant 1 : index
    %c1_70 = arith.constant 1 : index
    %189 = vector.load %arg4[%c0_67, %c1_68, %c1_69, %c1_70] : memref<2x3x18x18xf32, #tpu.memory_space<vmem>>, vector<2x1x16x16xf32>
    %190 = vector.shape_cast %189 : vector<2x1x16x16xf32> to vector<2x16x16xf32>
    %c13 = arith.constant 13 : index
    %191 = memref.load %arg1[%c13] : memref<81xf32, #tpu.memory_space<smem>>
    %192 = vector.broadcast %191 : f32 to vector<2x16x16xf32>
    %193 = arith.mulf %192, %190 : vector<2x16x16xf32>
    %194 = arith.addf %180, %193 : vector<2x16x16xf32>
    %c40 = arith.constant 40 : index
    %195 = memref.load %arg1[%c40] : memref<81xf32, #tpu.memory_space<smem>>
    %196 = vector.broadcast %195 : f32 to vector<2x16x16xf32>
    %197 = arith.mulf %196, %190 : vector<2x16x16xf32>
    %198 = arith.addf %184, %197 : vector<2x16x16xf32>
    %c67 = arith.constant 67 : index
    %199 = memref.load %arg1[%c67] : memref<81xf32, #tpu.memory_space<smem>>
    %200 = vector.broadcast %199 : f32 to vector<2x16x16xf32>
    %201 = arith.mulf %200, %190 : vector<2x16x16xf32>
    %202 = arith.addf %188, %201 : vector<2x16x16xf32>
    %c0_71 = arith.constant 0 : index
    %c1_72 = arith.constant 1 : index
    %c1_73 = arith.constant 1 : index
    %c2_74 = arith.constant 2 : index
    %203 = vector.load %arg4[%c0_71, %c1_72, %c1_73, %c2_74] : memref<2x3x18x18xf32, #tpu.memory_space<vmem>>, vector<2x1x16x16xf32>
    %204 = vector.shape_cast %203 : vector<2x1x16x16xf32> to vector<2x16x16xf32>
    %c14 = arith.constant 14 : index
    %205 = memref.load %arg1[%c14] : memref<81xf32, #tpu.memory_space<smem>>
    %206 = vector.broadcast %205 : f32 to vector<2x16x16xf32>
    %207 = arith.mulf %206, %204 : vector<2x16x16xf32>
    %208 = arith.addf %194, %207 : vector<2x16x16xf32>
    %c41 = arith.constant 41 : index
    %209 = memref.load %arg1[%c41] : memref<81xf32, #tpu.memory_space<smem>>
    %210 = vector.broadcast %209 : f32 to vector<2x16x16xf32>
    %211 = arith.mulf %210, %204 : vector<2x16x16xf32>
    %212 = arith.addf %198, %211 : vector<2x16x16xf32>
    %c68 = arith.constant 68 : index
    %213 = memref.load %arg1[%c68] : memref<81xf32, #tpu.memory_space<smem>>
    %214 = vector.broadcast %213 : f32 to vector<2x16x16xf32>
    %215 = arith.mulf %214, %204 : vector<2x16x16xf32>
    %216 = arith.addf %202, %215 : vector<2x16x16xf32>
    %c0_75 = arith.constant 0 : index
    %c1_76 = arith.constant 1 : index
    %c2_77 = arith.constant 2 : index
    %c0_78 = arith.constant 0 : index
    %217 = vector.load %arg4[%c0_75, %c1_76, %c2_77, %c0_78] : memref<2x3x18x18xf32, #tpu.memory_space<vmem>>, vector<2x1x16x16xf32>
    %218 = vector.shape_cast %217 : vector<2x1x16x16xf32> to vector<2x16x16xf32>
    %c15 = arith.constant 15 : index
    %219 = memref.load %arg1[%c15] : memref<81xf32, #tpu.memory_space<smem>>
    %220 = vector.broadcast %219 : f32 to vector<2x16x16xf32>
    %221 = arith.mulf %220, %218 : vector<2x16x16xf32>
    %222 = arith.addf %208, %221 : vector<2x16x16xf32>
    %c42 = arith.constant 42 : index
    %223 = memref.load %arg1[%c42] : memref<81xf32, #tpu.memory_space<smem>>
    %224 = vector.broadcast %223 : f32 to vector<2x16x16xf32>
    %225 = arith.mulf %224, %218 : vector<2x16x16xf32>
    %226 = arith.addf %212, %225 : vector<2x16x16xf32>
    %c69 = arith.constant 69 : index
    %227 = memref.load %arg1[%c69] : memref<81xf32, #tpu.memory_space<smem>>
    %228 = vector.broadcast %227 : f32 to vector<2x16x16xf32>
    %229 = arith.mulf %228, %218 : vector<2x16x16xf32>
    %230 = arith.addf %216, %229 : vector<2x16x16xf32>
    %c0_79 = arith.constant 0 : index
    %c1_80 = arith.constant 1 : index
    %c2_81 = arith.constant 2 : index
    %c1_82 = arith.constant 1 : index
    %231 = vector.load %arg4[%c0_79, %c1_80, %c2_81, %c1_82] : memref<2x3x18x18xf32, #tpu.memory_space<vmem>>, vector<2x1x16x16xf32>
    %232 = vector.shape_cast %231 : vector<2x1x16x16xf32> to vector<2x16x16xf32>
    %c16 = arith.constant 16 : index
    %233 = memref.load %arg1[%c16] : memref<81xf32, #tpu.memory_space<smem>>
    %234 = vector.broadcast %233 : f32 to vector<2x16x16xf32>
    %235 = arith.mulf %234, %232 : vector<2x16x16xf32>
    %236 = arith.addf %222, %235 : vector<2x16x16xf32>
    %c43 = arith.constant 43 : index
    %237 = memref.load %arg1[%c43] : memref<81xf32, #tpu.memory_space<smem>>
    %238 = vector.broadcast %237 : f32 to vector<2x16x16xf32>
    %239 = arith.mulf %238, %232 : vector<2x16x16xf32>
    %240 = arith.addf %226, %239 : vector<2x16x16xf32>
    %c70 = arith.constant 70 : index
    %241 = memref.load %arg1[%c70] : memref<81xf32, #tpu.memory_space<smem>>
    %242 = vector.broadcast %241 : f32 to vector<2x16x16xf32>
    %243 = arith.mulf %242, %232 : vector<2x16x16xf32>
    %244 = arith.addf %230, %243 : vector<2x16x16xf32>
    %c0_83 = arith.constant 0 : index
    %c1_84 = arith.constant 1 : index
    %c2_85 = arith.constant 2 : index
    %c2_86 = arith.constant 2 : index
    %245 = vector.load %arg4[%c0_83, %c1_84, %c2_85, %c2_86] : memref<2x3x18x18xf32, #tpu.memory_space<vmem>>, vector<2x1x16x16xf32>
    %246 = vector.shape_cast %245 : vector<2x1x16x16xf32> to vector<2x16x16xf32>
    %c17 = arith.constant 17 : index
    %247 = memref.load %arg1[%c17] : memref<81xf32, #tpu.memory_space<smem>>
    %248 = vector.broadcast %247 : f32 to vector<2x16x16xf32>
    %249 = arith.mulf %248, %246 : vector<2x16x16xf32>
    %250 = arith.addf %236, %249 : vector<2x16x16xf32>
    %c44 = arith.constant 44 : index
    %251 = memref.load %arg1[%c44] : memref<81xf32, #tpu.memory_space<smem>>
    %252 = vector.broadcast %251 : f32 to vector<2x16x16xf32>
    %253 = arith.mulf %252, %246 : vector<2x16x16xf32>
    %254 = arith.addf %240, %253 : vector<2x16x16xf32>
    %c71 = arith.constant 71 : index
    %255 = memref.load %arg1[%c71] : memref<81xf32, #tpu.memory_space<smem>>
    %256 = vector.broadcast %255 : f32 to vector<2x16x16xf32>
    %257 = arith.mulf %256, %246 : vector<2x16x16xf32>
    %258 = arith.addf %244, %257 : vector<2x16x16xf32>
    %c0_87 = arith.constant 0 : index
    %c2_88 = arith.constant 2 : index
    %c0_89 = arith.constant 0 : index
    %c0_90 = arith.constant 0 : index
    %259 = vector.load %arg4[%c0_87, %c2_88, %c0_89, %c0_90] : memref<2x3x18x18xf32, #tpu.memory_space<vmem>>, vector<2x1x16x16xf32>
    %260 = vector.shape_cast %259 : vector<2x1x16x16xf32> to vector<2x16x16xf32>
    %c18 = arith.constant 18 : index
    %261 = memref.load %arg1[%c18] : memref<81xf32, #tpu.memory_space<smem>>
    %262 = vector.broadcast %261 : f32 to vector<2x16x16xf32>
    %263 = arith.mulf %262, %260 : vector<2x16x16xf32>
    %264 = arith.addf %250, %263 : vector<2x16x16xf32>
    %c45 = arith.constant 45 : index
    %265 = memref.load %arg1[%c45] : memref<81xf32, #tpu.memory_space<smem>>
    %266 = vector.broadcast %265 : f32 to vector<2x16x16xf32>
    %267 = arith.mulf %266, %260 : vector<2x16x16xf32>
    %268 = arith.addf %254, %267 : vector<2x16x16xf32>
    %c72 = arith.constant 72 : index
    %269 = memref.load %arg1[%c72] : memref<81xf32, #tpu.memory_space<smem>>
    %270 = vector.broadcast %269 : f32 to vector<2x16x16xf32>
    %271 = arith.mulf %270, %260 : vector<2x16x16xf32>
    %272 = arith.addf %258, %271 : vector<2x16x16xf32>
    %c0_91 = arith.constant 0 : index
    %c2_92 = arith.constant 2 : index
    %c0_93 = arith.constant 0 : index
    %c1_94 = arith.constant 1 : index
    %273 = vector.load %arg4[%c0_91, %c2_92, %c0_93, %c1_94] : memref<2x3x18x18xf32, #tpu.memory_space<vmem>>, vector<2x1x16x16xf32>
    %274 = vector.shape_cast %273 : vector<2x1x16x16xf32> to vector<2x16x16xf32>
    %c19 = arith.constant 19 : index
    %275 = memref.load %arg1[%c19] : memref<81xf32, #tpu.memory_space<smem>>
    %276 = vector.broadcast %275 : f32 to vector<2x16x16xf32>
    %277 = arith.mulf %276, %274 : vector<2x16x16xf32>
    %278 = arith.addf %264, %277 : vector<2x16x16xf32>
    %c46 = arith.constant 46 : index
    %279 = memref.load %arg1[%c46] : memref<81xf32, #tpu.memory_space<smem>>
    %280 = vector.broadcast %279 : f32 to vector<2x16x16xf32>
    %281 = arith.mulf %280, %274 : vector<2x16x16xf32>
    %282 = arith.addf %268, %281 : vector<2x16x16xf32>
    %c73 = arith.constant 73 : index
    %283 = memref.load %arg1[%c73] : memref<81xf32, #tpu.memory_space<smem>>
    %284 = vector.broadcast %283 : f32 to vector<2x16x16xf32>
    %285 = arith.mulf %284, %274 : vector<2x16x16xf32>
    %286 = arith.addf %272, %285 : vector<2x16x16xf32>
    %c0_95 = arith.constant 0 : index
    %c2_96 = arith.constant 2 : index
    %c0_97 = arith.constant 0 : index
    %c2_98 = arith.constant 2 : index
    %287 = vector.load %arg4[%c0_95, %c2_96, %c0_97, %c2_98] : memref<2x3x18x18xf32, #tpu.memory_space<vmem>>, vector<2x1x16x16xf32>
    %288 = vector.shape_cast %287 : vector<2x1x16x16xf32> to vector<2x16x16xf32>
    %c20 = arith.constant 20 : index
    %289 = memref.load %arg1[%c20] : memref<81xf32, #tpu.memory_space<smem>>
    %290 = vector.broadcast %289 : f32 to vector<2x16x16xf32>
    %291 = arith.mulf %290, %288 : vector<2x16x16xf32>
    %292 = arith.addf %278, %291 : vector<2x16x16xf32>
    %c47 = arith.constant 47 : index
    %293 = memref.load %arg1[%c47] : memref<81xf32, #tpu.memory_space<smem>>
    %294 = vector.broadcast %293 : f32 to vector<2x16x16xf32>
    %295 = arith.mulf %294, %288 : vector<2x16x16xf32>
    %296 = arith.addf %282, %295 : vector<2x16x16xf32>
    %c74 = arith.constant 74 : index
    %297 = memref.load %arg1[%c74] : memref<81xf32, #tpu.memory_space<smem>>
    %298 = vector.broadcast %297 : f32 to vector<2x16x16xf32>
    %299 = arith.mulf %298, %288 : vector<2x16x16xf32>
    %300 = arith.addf %286, %299 : vector<2x16x16xf32>
    %c0_99 = arith.constant 0 : index
    %c2_100 = arith.constant 2 : index
    %c1_101 = arith.constant 1 : index
    %c0_102 = arith.constant 0 : index
    %301 = vector.load %arg4[%c0_99, %c2_100, %c1_101, %c0_102] : memref<2x3x18x18xf32, #tpu.memory_space<vmem>>, vector<2x1x16x16xf32>
    %302 = vector.shape_cast %301 : vector<2x1x16x16xf32> to vector<2x16x16xf32>
    %c21 = arith.constant 21 : index
    %303 = memref.load %arg1[%c21] : memref<81xf32, #tpu.memory_space<smem>>
    %304 = vector.broadcast %303 : f32 to vector<2x16x16xf32>
    %305 = arith.mulf %304, %302 : vector<2x16x16xf32>
    %306 = arith.addf %292, %305 : vector<2x16x16xf32>
    %c48 = arith.constant 48 : index
    %307 = memref.load %arg1[%c48] : memref<81xf32, #tpu.memory_space<smem>>
    %308 = vector.broadcast %307 : f32 to vector<2x16x16xf32>
    %309 = arith.mulf %308, %302 : vector<2x16x16xf32>
    %310 = arith.addf %296, %309 : vector<2x16x16xf32>
    %c75 = arith.constant 75 : index
    %311 = memref.load %arg1[%c75] : memref<81xf32, #tpu.memory_space<smem>>
    %312 = vector.broadcast %311 : f32 to vector<2x16x16xf32>
    %313 = arith.mulf %312, %302 : vector<2x16x16xf32>
    %314 = arith.addf %300, %313 : vector<2x16x16xf32>
    %c0_103 = arith.constant 0 : index
    %c2_104 = arith.constant 2 : index
    %c1_105 = arith.constant 1 : index
    %c1_106 = arith.constant 1 : index
    %315 = vector.load %arg4[%c0_103, %c2_104, %c1_105, %c1_106] : memref<2x3x18x18xf32, #tpu.memory_space<vmem>>, vector<2x1x16x16xf32>
    %316 = vector.shape_cast %315 : vector<2x1x16x16xf32> to vector<2x16x16xf32>
    %c22 = arith.constant 22 : index
    %317 = memref.load %arg1[%c22] : memref<81xf32, #tpu.memory_space<smem>>
    %318 = vector.broadcast %317 : f32 to vector<2x16x16xf32>
    %319 = arith.mulf %318, %316 : vector<2x16x16xf32>
    %320 = arith.addf %306, %319 : vector<2x16x16xf32>
    %c49 = arith.constant 49 : index
    %321 = memref.load %arg1[%c49] : memref<81xf32, #tpu.memory_space<smem>>
    %322 = vector.broadcast %321 : f32 to vector<2x16x16xf32>
    %323 = arith.mulf %322, %316 : vector<2x16x16xf32>
    %324 = arith.addf %310, %323 : vector<2x16x16xf32>
    %c76 = arith.constant 76 : index
    %325 = memref.load %arg1[%c76] : memref<81xf32, #tpu.memory_space<smem>>
    %326 = vector.broadcast %325 : f32 to vector<2x16x16xf32>
    %327 = arith.mulf %326, %316 : vector<2x16x16xf32>
    %328 = arith.addf %314, %327 : vector<2x16x16xf32>
    %c0_107 = arith.constant 0 : index
    %c2_108 = arith.constant 2 : index
    %c1_109 = arith.constant 1 : index
    %c2_110 = arith.constant 2 : index
    %329 = vector.load %arg4[%c0_107, %c2_108, %c1_109, %c2_110] : memref<2x3x18x18xf32, #tpu.memory_space<vmem>>, vector<2x1x16x16xf32>
    %330 = vector.shape_cast %329 : vector<2x1x16x16xf32> to vector<2x16x16xf32>
    %c23 = arith.constant 23 : index
    %331 = memref.load %arg1[%c23] : memref<81xf32, #tpu.memory_space<smem>>
    %332 = vector.broadcast %331 : f32 to vector<2x16x16xf32>
    %333 = arith.mulf %332, %330 : vector<2x16x16xf32>
    %334 = arith.addf %320, %333 : vector<2x16x16xf32>
    %c50 = arith.constant 50 : index
    %335 = memref.load %arg1[%c50] : memref<81xf32, #tpu.memory_space<smem>>
    %336 = vector.broadcast %335 : f32 to vector<2x16x16xf32>
    %337 = arith.mulf %336, %330 : vector<2x16x16xf32>
    %338 = arith.addf %324, %337 : vector<2x16x16xf32>
    %c77 = arith.constant 77 : index
    %339 = memref.load %arg1[%c77] : memref<81xf32, #tpu.memory_space<smem>>
    %340 = vector.broadcast %339 : f32 to vector<2x16x16xf32>
    %341 = arith.mulf %340, %330 : vector<2x16x16xf32>
    %342 = arith.addf %328, %341 : vector<2x16x16xf32>
    %c0_111 = arith.constant 0 : index
    %c2_112 = arith.constant 2 : index
    %c2_113 = arith.constant 2 : index
    %c0_114 = arith.constant 0 : index
    %343 = vector.load %arg4[%c0_111, %c2_112, %c2_113, %c0_114] : memref<2x3x18x18xf32, #tpu.memory_space<vmem>>, vector<2x1x16x16xf32>
    %344 = vector.shape_cast %343 : vector<2x1x16x16xf32> to vector<2x16x16xf32>
    %c24 = arith.constant 24 : index
    %345 = memref.load %arg1[%c24] : memref<81xf32, #tpu.memory_space<smem>>
    %346 = vector.broadcast %345 : f32 to vector<2x16x16xf32>
    %347 = arith.mulf %346, %344 : vector<2x16x16xf32>
    %348 = arith.addf %334, %347 : vector<2x16x16xf32>
    %c51 = arith.constant 51 : index
    %349 = memref.load %arg1[%c51] : memref<81xf32, #tpu.memory_space<smem>>
    %350 = vector.broadcast %349 : f32 to vector<2x16x16xf32>
    %351 = arith.mulf %350, %344 : vector<2x16x16xf32>
    %352 = arith.addf %338, %351 : vector<2x16x16xf32>
    %c78 = arith.constant 78 : index
    %353 = memref.load %arg1[%c78] : memref<81xf32, #tpu.memory_space<smem>>
    %354 = vector.broadcast %353 : f32 to vector<2x16x16xf32>
    %355 = arith.mulf %354, %344 : vector<2x16x16xf32>
    %356 = arith.addf %342, %355 : vector<2x16x16xf32>
    %c0_115 = arith.constant 0 : index
    %c2_116 = arith.constant 2 : index
    %c2_117 = arith.constant 2 : index
    %c1_118 = arith.constant 1 : index
    %357 = vector.load %arg4[%c0_115, %c2_116, %c2_117, %c1_118] : memref<2x3x18x18xf32, #tpu.memory_space<vmem>>, vector<2x1x16x16xf32>
    %358 = vector.shape_cast %357 : vector<2x1x16x16xf32> to vector<2x16x16xf32>
    %c25 = arith.constant 25 : index
    %359 = memref.load %arg1[%c25] : memref<81xf32, #tpu.memory_space<smem>>
    %360 = vector.broadcast %359 : f32 to vector<2x16x16xf32>
    %361 = arith.mulf %360, %358 : vector<2x16x16xf32>
    %362 = arith.addf %348, %361 : vector<2x16x16xf32>
    %c52 = arith.constant 52 : index
    %363 = memref.load %arg1[%c52] : memref<81xf32, #tpu.memory_space<smem>>
    %364 = vector.broadcast %363 : f32 to vector<2x16x16xf32>
    %365 = arith.mulf %364, %358 : vector<2x16x16xf32>
    %366 = arith.addf %352, %365 : vector<2x16x16xf32>
    %c79 = arith.constant 79 : index
    %367 = memref.load %arg1[%c79] : memref<81xf32, #tpu.memory_space<smem>>
    %368 = vector.broadcast %367 : f32 to vector<2x16x16xf32>
    %369 = arith.mulf %368, %358 : vector<2x16x16xf32>
    %370 = arith.addf %356, %369 : vector<2x16x16xf32>
    %c0_119 = arith.constant 0 : index
    %c2_120 = arith.constant 2 : index
    %c2_121 = arith.constant 2 : index
    %c2_122 = arith.constant 2 : index
    %371 = vector.load %arg4[%c0_119, %c2_120, %c2_121, %c2_122] : memref<2x3x18x18xf32, #tpu.memory_space<vmem>>, vector<2x1x16x16xf32>
    %372 = vector.shape_cast %371 : vector<2x1x16x16xf32> to vector<2x16x16xf32>
    %c26 = arith.constant 26 : index
    %373 = memref.load %arg1[%c26] : memref<81xf32, #tpu.memory_space<smem>>
    %374 = vector.broadcast %373 : f32 to vector<2x16x16xf32>
    %375 = arith.mulf %374, %372 : vector<2x16x16xf32>
    %376 = arith.addf %362, %375 : vector<2x16x16xf32>
    %c53 = arith.constant 53 : index
    %377 = memref.load %arg1[%c53] : memref<81xf32, #tpu.memory_space<smem>>
    %378 = vector.broadcast %377 : f32 to vector<2x16x16xf32>
    %379 = arith.mulf %378, %372 : vector<2x16x16xf32>
    %380 = arith.addf %366, %379 : vector<2x16x16xf32>
    %c80 = arith.constant 80 : index
    %381 = memref.load %arg1[%c80] : memref<81xf32, #tpu.memory_space<smem>>
    %382 = vector.broadcast %381 : f32 to vector<2x16x16xf32>
    %383 = arith.mulf %382, %372 : vector<2x16x16xf32>
    %384 = arith.addf %370, %383 : vector<2x16x16xf32>
    %c0_123 = arith.constant 0 : index
    %385 = memref.load %arg2[%c0_123] : memref<3xf32, #tpu.memory_space<smem>>
    %386 = vector.broadcast %385 : f32 to vector<2x16x16xf32>
    %387 = arith.addf %376, %386 : vector<2x16x16xf32>
    %cst_124 = arith.constant 0.000000e+00 : f32
    %388 = vector.broadcast %cst_124 : f32 to vector<2x16x16xf32>
    %389 = arith.maximumf %387, %388 : vector<2x16x16xf32>
    %c0_125 = arith.constant 0 : index
    %c0_126 = arith.constant 0 : index
    %c0_127 = arith.constant 0 : index
    %c0_128 = arith.constant 0 : index
    %390 = vector.load %arg0[%c0_125, %c0_126, %c0_127, %c0_128] : memref<2x3x16x16xf32, #tpu.memory_space<vmem>>, vector<2x1x16x16xf32>
    %391 = vector.shape_cast %390 : vector<2x1x16x16xf32> to vector<2x16x16xf32>
    %392 = arith.addf %389, %391 : vector<2x16x16xf32>
    %c0_129 = arith.constant 0 : index
    %c0_130 = arith.constant 0 : index
    %c0_131 = arith.constant 0 : index
    %c0_132 = arith.constant 0 : index
    %393 = vector.load %arg3[%c0_129, %c0_130, %c0_131, %c0_132] : memref<2x3x16x16xf32, #tpu.memory_space<vmem>>, vector<2x1x16x16xf32>
    %394 = vector.shape_cast %393 : vector<2x1x16x16xf32> to vector<2x16x16xf32>
    %395 = vector.shape_cast %392 : vector<2x16x16xf32> to vector<2x1x16x16xf32>
    tpu.vector_store %arg3[%c0_129, %c0_130, %c0_131, %c0_132], %395 {strides = array<i32>} : memref<2x3x16x16xf32, #tpu.memory_space<vmem>>, vector<2x1x16x16xf32>,
    %c1_133 = arith.constant 1 : index
    %396 = memref.load %arg2[%c1_133] : memref<3xf32, #tpu.memory_space<smem>>
    %397 = vector.broadcast %396 : f32 to vector<2x16x16xf32>
    %398 = arith.addf %380, %397 : vector<2x16x16xf32>
    %cst_134 = arith.constant 0.000000e+00 : f32
    %399 = vector.broadcast %cst_134 : f32 to vector<2x16x16xf32>
    %400 = arith.maximumf %398, %399 : vector<2x16x16xf32>
    %c0_135 = arith.constant 0 : index
    %c1_136 = arith.constant 1 : index
    %c0_137 = arith.constant 0 : index
    %c0_138 = arith.constant 0 : index
    %401 = vector.load %arg0[%c0_135, %c1_136, %c0_137, %c0_138] : memref<2x3x16x16xf32, #tpu.memory_space<vmem>>, vector<2x1x16x16xf32>
    %402 = vector.shape_cast %401 : vector<2x1x16x16xf32> to vector<2x16x16xf32>
    %403 = arith.addf %400, %402 : vector<2x16x16xf32>
    %c0_139 = arith.constant 0 : index
    %c1_140 = arith.constant 1 : index
    %c0_141 = arith.constant 0 : index
    %c0_142 = arith.constant 0 : index
    %404 = vector.load %arg3[%c0_139, %c1_140, %c0_141, %c0_142] : memref<2x3x16x16xf32, #tpu.memory_space<vmem>>, vector<2x1x16x16xf32>
    %405 = vector.shape_cast %404 : vector<2x1x16x16xf32> to vector<2x16x16xf32>
    %406 = vector.shape_cast %403 : vector<2x16x16xf32> to vector<2x1x16x16xf32>
    tpu.vector_store %arg3[%c0_139, %c1_140, %c0_141, %c0_142], %406 {strides = array<i32>} : memref<2x3x16x16xf32, #tpu.memory_space<vmem>>, vector<2x1x16x16xf32>,
    %c2_143 = arith.constant 2 : index
    %407 = memref.load %arg2[%c2_143] : memref<3xf32, #tpu.memory_space<smem>>
    %408 = vector.broadcast %407 : f32 to vector<2x16x16xf32>
    %409 = arith.addf %384, %408 : vector<2x16x16xf32>
    %cst_144 = arith.constant 0.000000e+00 : f32
    %410 = vector.broadcast %cst_144 : f32 to vector<2x16x16xf32>
    %411 = arith.maximumf %409, %410 : vector<2x16x16xf32>
    %c0_145 = arith.constant 0 : index
    %c2_146 = arith.constant 2 : index
    %c0_147 = arith.constant 0 : index
    %c0_148 = arith.constant 0 : index
    %412 = vector.load %arg0[%c0_145, %c2_146, %c0_147, %c0_148] : memref<2x3x16x16xf32, #tpu.memory_space<vmem>>, vector<2x1x16x16xf32>
    %413 = vector.shape_cast %412 : vector<2x1x16x16xf32> to vector<2x16x16xf32>
    %414 = arith.addf %411, %413 : vector<2x16x16xf32>
    %c0_149 = arith.constant 0 : index
    %c2_150 = arith.constant 2 : index
    %c0_151 = arith.constant 0 : index
    %c0_152 = arith.constant 0 : index
    %415 = vector.load %arg3[%c0_149, %c2_150, %c0_151, %c0_152] : memref<2x3x16x16xf32, #tpu.memory_space<vmem>>, vector<2x1x16x16xf32>
    %416 = vector.shape_cast %415 : vector<2x1x16x16xf32> to vector<2x16x16xf32>
    %417 = vector.shape_cast %414 : vector<2x16x16xf32> to vector<2x1x16x16xf32>
    tpu.vector_store %arg3[%c0_149, %c2_150, %c0_151, %c0_152], %417 {strides = array<i32>} : memref<2x3x16x16xf32, #tpu.memory_space<vmem>>, vector<2x1x16x16xf32>,
    return
  }
}

</mosaic_0001>

<bundles_post_ra>
// kernel: tpu_custom_call.1
= control target key start
LH: loop header
LB: loop body
LE: loop exit
PB: predicated region body
PF: predicated region fallthrough
CT: control target
= control target key end

     0   :  { %8 = vsyncpa [#allocation4], 0  ;;  %s3269_s0 = inlined_call_operand.hbm [shape: f32[2,3,16,16], index: 0, kind: input, shape index: {}]   ;;  %s3270_s1 = inlined_call_operand.vmem [shape: f32[81], index: 1, kind: input, shape index: {}]   ;;  %s3271_s2 = inlined_call_operand.vmem [shape: f32[3], index: 2, kind: input, shape index: {}]   ;;  %s3272_s3 = inlined_call_operand.hbm [shape: f32[2,3,16,16], index: 3, kind: output, shape index: {}]  }
   0x1   :  { %9 = vsyncpa [#allocation6], 0 }
   0x2   :  { %10 = vsyncpa [#allocation9], 0 }
   0x3   :  { %11 = vsyncpa [#allocation5], 0  ;;  %s2117_s12 = smov [#allocation3]   ;;  %s30_s16 = sshll.u32 %s3270_s1, 4  ;;  %s31_s16 = int_to_ptr.vmem [resolvable:$true] %s30_s16 }
   0x4   :  { %s17_s13 = sshll.u32 %s2117_s12, 4  ;;  %s2041_s19 = scalar_lea.hbm %s3269_s0, 1536  ;;  %s18_s13 = int_to_ptr.vmem [resolvable:$true] %s17_s13 }
   0x5   :  { %p2042_p0 = scmp.ne.s32.totalorder %s3269_s0, %s2041_s19  ;;  %p2045_p1 = scmp.lt.u32.totalorder %s2041_s19, %s3269_s0 }
   0x7   :  { %p2047_p2 = pnand %p2045_p1, %p2042_p0 }
   0x9   :  { %2050 = shalt.err (!%p2047_p2)
}
   0xa   :  { %s2051_s24 = scalar_lea.vmem %s18_s13, 1536  ;;  %p2056_p4 = scmp.lt.s32.totalorder %s18_s13, %s18_s13 }
   0xb   :  { %p2052_p3 = scmp.ne.s32.totalorder %s18_s13, %s2051_s24  ;;  %p2057_p5 = scmp.lt.s32.totalorder %s2051_s24, %s2051_s24 }
   0xd   :  { %p2058_p6 = por %p2057_p5, %p2056_p4 }
   0xf   :  { %p2059_p7 = pnand %p2058_p6, %p2052_p3 }
  0x11   :  { %2062 = shalt.err (!%p2059_p7)
}
  0x12   :  { %s2118_s1 = smov 128   ;;  %s2119_s25 = smov 8  }
  0x13   :  { %23 = dma.hbm_to_vmem [thread:$0]  %s3269_s0, 1536, %s18_s13, [#allocation4], %s2118_s1, %s2118_s1, %s2119_s25  }
  0x14   :  { %s2063_s28 = scalar_lea.vmem %s31_s16, 16  ;;  %p2068_p9 = scmp.lt.s32.totalorder %s31_s16, %s31_s16 }
  0x15   :  { %p2064_p8 = scmp.ne.s32.totalorder %s31_s16, %s2063_s28  ;;  %p2069_p10 = scmp.lt.s32.totalorder %s2063_s28, %s2063_s28 }
  0x17   :  { %p2070_p11 = por %p2069_p10, %p2068_p9 }
  0x19   :  { %p2071_p12 = pnand %p2070_p11, %p2064_p8 }
  0x1b   :  { %2074 = shalt.err (!%p2071_p12)
}
  0x1c   :  { %s2120_s29 = smov [#allocation7]   ;;  %s40_s5 = sshll.u32 %s3271_s2, 4  ;;  %s41_s5 = int_to_ptr.vmem [resolvable:$true] %s40_s5 }
  0x1d   :  { %33 = dma.vmem_to_smem %s31_s16, 16, %s2120_s29, [#allocation6]  }
  0x1e   :  { %s2075_s6 = scalar_lea.vmem %s41_s5, 16  ;;  %p2080_p0 = scmp.lt.s32.totalorder %s41_s5, %s41_s5 }
  0x1f   :  { %p2076_p13 = scmp.ne.s32.totalorder %s41_s5, %s2075_s6  ;;  %p2081_p1 = scmp.lt.s32.totalorder %s2075_s6, %s2075_s6 }
  0x21   :  { %p2082_p2 = por %p2081_p1, %p2080_p0 }
  0x23   :  { %p2083_p3 = pnand %p2082_p2, %p2076_p13 }
  0x25   :  { %2086 = shalt.err (!%p2083_p3)
}
  0x26   :  { %s2121_s0 = smov [#allocation8]  }
  0x27   :  { %43 = dma.vmem_to_smem %s41_s5, 16, %s2121_s0, [#allocation9]  }
  0x28   :  { %2109 = dma.done.wait [#allocation4], 1536  }
  0x29   :  { %2110 = vsyncadd [#allocation4], 4294965760 }
  0x2a   :  { %2111 = dma.done.wait [#allocation6], 16  }
  0x2b   :  { %2112 = vsyncadd [#allocation6], 4294967280 }
  0x2c   :  { %2113 = dma.done.wait [#allocation9], 16  }
  0x2d   :  { %2114 = vsyncadd [#allocation9], 4294967280 }
  0x2e   :  { %53 = sfence }
  0x2f   :  { %v76_v0 = vld [vmem:[#allocation3 + $0x10] sm:$0xff]  ;;  %v74_v1 = vld [vmem:[#allocation3] sm:$0xff]  ;;  %vm54_vm0 = vcmask 146432   ;;  %s2122_s2 = smov 1   ;;  %vm57_vm1 = vcmask 140288   ;;  %v77_v2 = vld [vmem:[#allocation3 + $0x18] sm:$0xff] }
  0x30   :  { %102 = vrot.lane.b32.xlu1 %v76_v0, %s2122_s2  ;;  %98 = vrot.lane.b32.xlu0 %v74_v1, %s2122_s2  ;;  %v75_v3 = vld [vmem:[#allocation3 + $0x8] sm:$0xff]  ;;  %v2123_v4 = vmov 0.0   ;;  %v78_v6 = vld [vmem:[#allocation3 + $0x20] sm:$0xff]  ;;  %v81_v7 = vld [vmem:[#allocation3 + $0x38] sm:$0xff]  ;;  %vm134_vm2 = vcmask 138248   ;;  %s1951_s7 = sld [smem:[#allocation7 + $0x1]] }
  0x31   :  { %59 = vst.msk [vmem:[#allocation2 + $0x18] sm:$0xff] %vm54_vm0, %v2123_v4  ;;  %60 = vst.msk [vmem:[#allocation2 + $0x20] sm:$0xff] %vm54_vm0, %v2123_v4  ;;  %v79_v5 = vld [vmem:[#allocation3 + $0x28] sm:$0xff]  ;;  %v80_v8 = vld [vmem:[#allocation3 + $0x30] sm:$0xff]  ;;  %s2124_s8 = smov 127   ;;  %s1952_s9 = sld [smem:[#allocation7 + $0x1c]] }
  0x32   :  { %55 = vst.msk [vmem:[#allocation2] sm:$0xff] %vm54_vm0, %v2123_v4  ;;  %56 = vst.msk [vmem:[#allocation2 + $0x8] sm:$0xff] %vm54_vm0, %v2123_v4  ;;  %v82_v9 = vld [vmem:[#allocation3 + $0x40] sm:$0xff]  ;;  %v83_v10 = vld [vmem:[#allocation3 + $0x48] sm:$0xff]  ;;  %s1953_s10 = sld [smem:[#allocation7 + $0x37]]  ;;  %s1954_s11 = sld [smem:[#allocation7 + $0x2]] }
  0x33   :  { %62 = vst.msk [vmem:[#allocation2 + $0x30] sm:$0xff] %vm54_vm0, %v2123_v4  ;;  %63 = vst.msk [vmem:[#allocation2 + $0x38] sm:$0xff] %vm54_vm0, %v2123_v4  ;;  %v84_v11 = vld [vmem:[#allocation3 + $0x50] sm:$0xff]  ;;  %v85_v12 = vld [vmem:[#allocation3 + $0x58] sm:$0xff]  ;;  %s1955_s12 = sld [smem:[#allocation7 + $0x1d]]  ;;  %s2125_s13 = smov 126  }
  0x34   :  { %65 = vst.msk [vmem:[#allocation2 + $0x48] sm:$0xff] %vm54_vm0, %v2123_v4  ;;  %66 = vst.msk [vmem:[#allocation2 + $0x50] sm:$0xff] %vm54_vm0, %v2123_v4  ;;  %104 = vrot.lane.b32.xlu1 %v77_v2, %s2122_s2  ;;  %100 = vrot.lane.b32.xlu0 %v75_v3, %s2122_s2  ;;  %s1956_s14 = sld [smem:[#allocation7 + $0x38]]  ;;  %s1960_s15 = sld [smem:[#allocation7 + $0x4]]  ;;  %vm1877_vm3 = vcmask 130048  }
  0x35   :  { %68 = vst.msk [vmem:[#allocation2 + $0x60] sm:$0xff] %vm54_vm0, %v2123_v4  ;;  %69 = vst.msk [vmem:[#allocation2 + $0x68] sm:$0xff] %vm54_vm0, %v2123_v4  ;;  %s1961_s16 = sld [smem:[#allocation7 + $0x1f]]  ;;  %s1962_s17 = sld [smem:[#allocation7 + $0x3a]] }
  0x36   :  { %71 = vst.msk [vmem:[#allocation2 + $0x78] sm:$0xff] %vm54_vm0, %v2123_v4  ;;  %72 = vst.msk [vmem:[#allocation2 + $0x80] sm:$0xff] %vm54_vm0, %v2123_v4  ;;  %v182_v17 = vstv %s1951_s7  ;;  %s1963_s18 = sld [smem:[#allocation7 + $0x5]]  ;;  %s1964_s19 = sld [smem:[#allocation7 + $0x20]] }
  0x37   :  { %61 = vst.msk [vmem:[#allocation2 + $0x28] sm:$0x3] %vm57_vm1, %v2123_v4  ;;  %58 = vst.msk [vmem:[#allocation2 + $0x10] sm:$0x3] %vm57_vm1, %v2123_v4  ;;  %v208_v34 = vstv %s1952_s9  ;;  %s1965_s20 = sld [smem:[#allocation7 + $0x3b]]  ;;  %s1969_s21 = sld [smem:[#allocation7 + $0x7]] }
  0x38   :  { %64 = vst.msk [vmem:[#allocation2 + $0x40] sm:$0x3] %vm57_vm1, %v2123_v4  ;;  %67 = vst.msk [vmem:[#allocation2 + $0x58] sm:$0x3] %vm57_vm1, %v2123_v4  ;;  %108 = vrot.lane.b32.xlu1 %v79_v5, %s2122_s2  ;;  %106 = vrot.lane.b32.xlu0 %v78_v6, %s2122_s2  ;;  %v234_v39 = vstv %s1953_s10  ;;  %v260_v44 = vstv %s1954_s11  ;;  %s1970_s22 = sld [smem:[#allocation7 + $0x22]]  ;;  %s1971_s23 = sld [smem:[#allocation7 + $0x3d]] }
  0x39   :  { %70 = vst.msk [vmem:[#allocation2 + $0x70] sm:$0x3] %vm57_vm1, %v2123_v4  ;;  %73 = vst.msk [vmem:[#allocation2 + $0x88] sm:$0x3] %vm57_vm1, %v2123_v4  ;;  %v286_v49 = vstv %s1955_s12  ;;  %s1972_s24 = sld [smem:[#allocation7 + $0x8]]  ;;  %s1973_s26 = sld [smem:[#allocation7 + $0x23]] }
  0x3a   :  { %v312_v54 = vstv %s1956_s14  ;;  %v372_v60 = vstv %s1960_s15  ;;  %s1974_s27 = sld [smem:[#allocation7 + $0x3e]]  ;;  %s151_s28 = sld [smem:[#allocation7]] }
  0x3b   :  { %v398_v4 = vstv %s1961_s16  ;;  %s1957_s29 = sld [smem:[#allocation7 + $0x3]]  ;;  %s1978_s4 = sld [smem:[#allocation7 + $0xa]] }
  0x3c   :  { %112 = vrot.lane.b32.xlu1 %v81_v7, %s2122_s2  ;;  %110 = vrot.lane.b32.xlu0 %v80_v8, %s2122_s2  ;;  %s1949_s30 = sld [smem:[#allocation7 + $0x1b]]  ;;  %s1950_s5 = sld [smem:[#allocation7 + $0x36]] }
  0x3d   :  { %s2396_s6 = sld [smem:[#allocation7 + $0x25]]  ;;  %s2398_s0 = sld [smem:[#allocation7 + $0x1e]] }
  0x3e   :  { %s2436_s7 = sld [smem:[#allocation7 + $0x39]]  ;;  %s1981_s9 = sld [smem:[#allocation7 + $0xb]] }
  0x3f   :  { %s1982_s10 = sld [smem:[#allocation7 + $0x26]]  ;;  %s1983_s11 = sld [smem:[#allocation7 + $0x41]] }
  0x40   :  { %114 = vrot.lane.b32.xlu0 %v82_v9, %s2122_s2  ;;  %116 = vrot.lane.b32.xlu1 %v83_v10, %s2122_s2  ;;  %v424_v9 = vstv %s1962_s17  ;;  %s1966_s12 = sld [smem:[#allocation7 + $0x6]]  ;;  %s1987_s14 = sld [smem:[#allocation7 + $0xd]] }
  0x41   :  { %s2542_s15 = sld [smem:[#allocation7 + $0x21]]  ;;  %s2548_s16 = sld [smem:[#allocation7 + $0x28]] }
  0x42   :  { %s2575_s17 = sld [smem:[#allocation7 + $0x3c]] }
  0x44   :  { %118 = vrot.lane.b32.xlu0 %v84_v11, %s2122_s2  ;;  %120 = vrot.lane.b32.xlu1 %v85_v12, %s2122_s2  ;;  %s2433_s2 = sld [smem:[#allocation7 + $0x40]] }
  0xa2   :  { %v103_v13 = vpop.permute.xlu1 %102  ;;  %v99_v14 = vpop.permute.xlu0 %98 }
  0xa3   :  { %137 = vst.msk [vmem:[#allocation2 + $0x19] sm:$0xff] %vm134_vm2, %v103_v13  ;;  %135 = vst.msk [vmem:[#allocation2 + $0x1] sm:$0xff] %vm134_vm2, %v99_v14  ;;  %v450_v14 = vstv %s1963_s18  ;;  %s1989_s18 = sld [smem:[#allocation7 + $0x43]] }
  0xa6   :  { %v105_v15 = vpop.permute.xlu1 %104  ;;  %v101_v16 = vpop.permute.xlu0 %100 }
  0xa7   :  { %138 = vst.msk [vmem:[#allocation2 + $0x21] sm:$0xff] %vm134_vm2, %v105_v15  ;;  %136 = vst.msk [vmem:[#allocation2 + $0x9] sm:$0xff] %vm134_vm2, %v101_v16 }
  0xaa   :  { %v109_v18 = vpop.permute.xlu1 %108  ;;  %v107_v19 = vpop.permute.xlu0 %106  ;;  %v2202_v20 = vld [vmem:[#allocation2] sm:$0xff] }
  0xab   :  { %140 = vst.msk [vmem:[#allocation2 + $0x39] sm:$0xff] %vm134_vm2, %v109_v18  ;;  %139 = vst.msk [vmem:[#allocation2 + $0x31] sm:$0xff] %vm134_vm2, %v107_v19  ;;  %v183_v21 = vmul.f32 %v182_v17, %v2202_v20  ;;  %v209_v36 = vmul.f32 %v208_v34, %v2202_v20  ;;  %v235_v41 = vmul.f32 %v234_v39, %v2202_v20  ;;  %v2266_v61 = vld [vmem:[#allocation2 + $0x1] sm:$0xff]  ;;  %v476_v19 = vstv %s1964_s19  ;;  %s1990_s19 = sld [smem:[#allocation7 + $0xe]] }
  0xac   :  { %v261_v46 = vmul.f32 %v260_v44, %v2202_v20  ;;  %v287_v51 = vmul.f32 %v286_v49, %v2202_v20  ;;  %v313_v56 = vmul.f32 %v312_v54, %v2202_v20  ;;  %v373_v63 = vmul.f32 %v372_v60, %v2266_v61 }
  0xad   :  { %191 = vrot.lane.b32.xlu0 %v183_v21, %s2124_s8  ;;  %v399_v6 = vmul.f32 %v398_v4, %v2266_v61  ;;  %v425_v11 = vmul.f32 %v424_v9, %v2266_v61  ;;  %v451_v16 = vmul.f32 %v450_v14, %v2266_v61 }
  0xae   :  { %v113_v22 = vpop.permute.xlu1 %112  ;;  %v111_v23 = vpop.permute.xlu0 %110  ;;  %v2208_v24 = vld [vmem:[#allocation2 + $0x8] sm:$0xff] }
  0xaf   :  { %142 = vst.msk [vmem:[#allocation2 + $0x51] sm:$0xff] %vm134_vm2, %v113_v22  ;;  %141 = vst.msk [vmem:[#allocation2 + $0x49] sm:$0xff] %vm134_vm2, %v111_v23  ;;  %v184_v25 = vmul.f32 %v182_v17, %v2208_v24  ;;  %v210_v35 = vmul.f32 %v208_v34, %v2208_v24  ;;  %v236_v40 = vmul.f32 %v234_v39, %v2208_v24  ;;  %v2264_v59 = vld [vmem:[#allocation2 + $0x9] sm:$0xff] }
  0xb0   :  { %v262_v45 = vmul.f32 %v260_v44, %v2208_v24  ;;  %v288_v50 = vmul.f32 %v286_v49, %v2208_v24  ;;  %v314_v55 = vmul.f32 %v312_v54, %v2208_v24  ;;  %v374_v62 = vmul.f32 %v372_v60, %v2264_v59 }
  0xb1   :  { %193 = vrot.lane.b32.xlu1 %v184_v25, %s2124_s8  ;;  %v400_v5 = vmul.f32 %v398_v4, %v2264_v59  ;;  %v426_v10 = vmul.f32 %v424_v9, %v2264_v59  ;;  %v452_v15 = vmul.f32 %v450_v14, %v2264_v59  ;;  %v478_v21 = vmul.f32 %v476_v19, %v2264_v59 }
  0xb2   :  { %v115_v26 = vpop.permute.xlu0 %114  ;;  %v117_v27 = vpop.permute.xlu1 %116  ;;  %v477_v22 = vmul.f32 %v476_v19, %v2266_v61 }
  0xb3   :  { %143 = vst.msk [vmem:[#allocation2 + $0x61] sm:$0xff] %vm134_vm2, %v115_v26  ;;  %144 = vst.msk [vmem:[#allocation2 + $0x69] sm:$0xff] %vm134_vm2, %v117_v27  ;;  %v502_v26 = vstv %s1965_s20  ;;  %s1991_s20 = sld [smem:[#allocation7 + $0x29]] }
  0xb4   :  { %v504_v27 = vmul.f32 %v502_v26, %v2264_v59 }
  0xb6   :  { %v2216_v28 = vld [vmem:[#allocation2 + $0x50] sm:$0xff]  ;;  %v2218_v29 = vld [vmem:[#allocation2 + $0x48] sm:$0xff]  ;;  %v119_v30 = vpop.permute.xlu0 %118  ;;  %v121_v31 = vpop.permute.xlu1 %120 }
  0xb7   :  { %v186_v32 = vmul.f32 %v182_v17, %v2216_v28  ;;  %v185_v33 = vmul.f32 %v182_v17, %v2218_v29  ;;  %145 = vst.msk [vmem:[#allocation2 + $0x79] sm:$0xff] %vm134_vm2, %v119_v30  ;;  %146 = vst.msk [vmem:[#allocation2 + $0x81] sm:$0xff] %vm134_vm2, %v121_v31  ;;  %v212_v37 = vmul.f32 %v208_v34, %v2216_v28  ;;  %v2272_v0 = vld [vmem:[#allocation2 + $0x51] sm:$0xff]  ;;  %v2274_v1 = vld [vmem:[#allocation2 + $0x49] sm:$0xff] }
  0xb8   :  { %v211_v38 = vmul.f32 %v208_v34, %v2218_v29  ;;  %v238_v42 = vmul.f32 %v234_v39, %v2216_v28  ;;  %v237_v43 = vmul.f32 %v234_v39, %v2218_v29  ;;  %v264_v47 = vmul.f32 %v260_v44, %v2216_v28  ;;  %v2330_v39 = vld [vmem:[#allocation2 + $0x4a] sm:$0xff] }
  0xb9   :  { %197 = vrot.lane.b32.xlu1 %v186_v32, %s2124_s8  ;;  %195 = vrot.lane.b32.xlu0 %v185_v33, %s2124_s8  ;;  %v263_v48 = vmul.f32 %v260_v44, %v2218_v29  ;;  %v290_v52 = vmul.f32 %v286_v49, %v2216_v28  ;;  %v289_v53 = vmul.f32 %v286_v49, %v2218_v29  ;;  %v2320_v33 = vld [vmem:[#allocation2 + $0xa] sm:$0xff]  ;;  %v562_v34 = vstv %s1969_s21  ;;  %s1992_s21 = sld [smem:[#allocation7 + $0x44]] }
  0xba   :  { %v316_v57 = vmul.f32 %v312_v54, %v2216_v28  ;;  %v315_v58 = vmul.f32 %v312_v54, %v2218_v29  ;;  %v376_v2 = vmul.f32 %v372_v60, %v2272_v0  ;;  %v375_v3 = vmul.f32 %v372_v60, %v2274_v1 }
  0xbb   :  { %v402_v7 = vmul.f32 %v398_v4, %v2272_v0  ;;  %v401_v8 = vmul.f32 %v398_v4, %v2274_v1  ;;  %v428_v12 = vmul.f32 %v424_v9, %v2272_v0  ;;  %v427_v13 = vmul.f32 %v424_v9, %v2274_v1 }
  0xbc   :  { %v454_v17 = vmul.f32 %v450_v14, %v2272_v0  ;;  %v453_v18 = vmul.f32 %v450_v14, %v2274_v1  ;;  %v480_v23 = vmul.f32 %v476_v19, %v2272_v0  ;;  %v479_v25 = vmul.f32 %v476_v19, %v2274_v1 }
  0xbd   :  { %219 = vrot.lane.b32.xlu1 %v210_v35, %s2124_s8  ;;  %217 = vrot.lane.b32.xlu0 %v209_v36, %s2124_s8  ;;  %v503_v30 = vmul.f32 %v502_v26, %v2266_v61  ;;  %v506_v31 = vmul.f32 %v502_v26, %v2272_v0  ;;  %v505_v32 = vmul.f32 %v502_v26, %v2274_v1  ;;  %v2322_v35 = vld [vmem:[#allocation2 + $0x2] sm:$0xff]  ;;  %v640_v54 = vstv %s1972_s24  ;;  %s2679_s24 = sld [smem:[#allocation7 + $0x24]] }
  0xbe   :  { %v564_v36 = vmul.f32 %v562_v34, %v2320_v33  ;;  %v753_v26 = vstv %s1978_s4  ;;  %s2001_s4 = sld [smem:[#allocation7 + $0x47]] }
  0xc1   :  { %223 = vrot.lane.b32.xlu1 %v212_v37, %s2124_s8  ;;  %221 = vrot.lane.b32.xlu0 %v211_v38, %s2124_s8  ;;  %v563_v37 = vmul.f32 %v562_v34, %v2322_v35  ;;  %v2328_v38 = vld [vmem:[#allocation2 + $0x52] sm:$0xff] }
  0xc5   :  { %245 = vrot.lane.b32.xlu1 %v236_v40, %s2124_s8  ;;  %243 = vrot.lane.b32.xlu0 %v235_v41, %s2124_s8  ;;  %v566_v40 = vmul.f32 %v562_v34, %v2328_v38  ;;  %v565_v41 = vmul.f32 %v562_v34, %v2330_v39 }
  0xc9   :  { %249 = vrot.lane.b32.xlu1 %v238_v42, %s2124_s8  ;;  %247 = vrot.lane.b32.xlu0 %v237_v43, %s2124_s8  ;;  %v588_v42 = vstv %s1970_s22  ;;  %s1975_s22 = sld [smem:[#allocation7 + $0x9]] }
  0xca   :  { %v590_v43 = vmul.f32 %v588_v42, %v2320_v33  ;;  %v589_v44 = vmul.f32 %v588_v42, %v2322_v35 }
  0xcd   :  { %271 = vrot.lane.b32.xlu1 %v262_v45, %s2125_s13  ;;  %269 = vrot.lane.b32.xlu0 %v261_v46, %s2125_s13  ;;  %v592_v45 = vmul.f32 %v588_v42, %v2328_v38  ;;  %v591_v46 = vmul.f32 %v588_v42, %v2330_v39  ;;  %v2406_v42 = vld [vmem:[#allocation2 + $0x18] sm:$0xff] }
  0xd1   :  { %275 = vrot.lane.b32.xlu1 %v264_v47, %s2125_s13  ;;  %273 = vrot.lane.b32.xlu0 %v263_v48, %s2125_s13  ;;  %v614_v47 = vstv %s1971_s23  ;;  %s1996_s23 = sld [smem:[#allocation7 + $0x10]] }
  0xd2   :  { %v616_v48 = vmul.f32 %v614_v47, %v2320_v33  ;;  %v615_v49 = vmul.f32 %v614_v47, %v2322_v35 }
  0xd5   :  { %297 = vrot.lane.b32.xlu1 %v288_v50, %s2125_s13  ;;  %295 = vrot.lane.b32.xlu0 %v287_v51, %s2125_s13 }
  0xd9   :  { %301 = vrot.lane.b32.xlu1 %v290_v52, %s2125_s13  ;;  %299 = vrot.lane.b32.xlu0 %v289_v53, %s2125_s13  ;;  %v618_v52 = vmul.f32 %v614_v47, %v2328_v38  ;;  %v617_v53 = vmul.f32 %v614_v47, %v2330_v39 }
  0xdd   :  { %323 = vrot.lane.b32.xlu1 %v314_v55, %s2125_s13  ;;  %321 = vrot.lane.b32.xlu0 %v313_v56, %s2125_s13 }
  0xe1   :  { %327 = vrot.lane.b32.xlu1 %v316_v57, %s2125_s13  ;;  %325 = vrot.lane.b32.xlu0 %v315_v58, %s2125_s13  ;;  %v642_v57 = vmul.f32 %v640_v54, %v2320_v33  ;;  %v641_v58 = vmul.f32 %v640_v54, %v2322_v35 }
  0xe5   :  { %383 = vrot.lane.b32.xlu1 %v374_v62, %s2124_s8  ;;  %381 = vrot.lane.b32.xlu0 %v373_v63, %s2124_s8  ;;  %v644_v63 = vmul.f32 %v640_v54, %v2328_v38 }
  0xe9   :  { %387 = vrot.lane.b32.xlu1 %v376_v2, %s2124_s8  ;;  %385 = vrot.lane.b32.xlu0 %v375_v3, %s2124_s8  ;;  %v643_v2 = vmul.f32 %v640_v54, %v2330_v39  ;;  %v666_v3 = vstv %s1973_s26  ;;  %s2685_s26 = sld [smem:[#allocation7 + $0x2b]] }
  0xed   :  { %409 = vrot.lane.b32.xlu1 %v400_v5, %s2124_s8  ;;  %407 = vrot.lane.b32.xlu0 %v399_v6, %s2124_s8  ;;  %v668_v6 = vmul.f32 %v666_v3, %v2320_v33 }
  0xf1   :  { %413 = vrot.lane.b32.xlu1 %v402_v7, %s2124_s8  ;;  %411 = vrot.lane.b32.xlu0 %v401_v8, %s2124_s8  ;;  %v667_v7 = vmul.f32 %v666_v3, %v2322_v35 }
  0xf5   :  { %435 = vrot.lane.b32.xlu1 %v426_v10, %s2124_s8  ;;  %433 = vrot.lane.b32.xlu0 %v425_v11, %s2124_s8  ;;  %v670_v10 = vmul.f32 %v666_v3, %v2328_v38  ;;  %v669_v11 = vmul.f32 %v666_v3, %v2330_v39 }
  0xf9   :  { %439 = vrot.lane.b32.xlu1 %v428_v12, %s2124_s8  ;;  %437 = vrot.lane.b32.xlu0 %v427_v13, %s2124_s8  ;;  %v692_v12 = vstv %s1974_s27  ;;  %v152_v13 = vstv %s151_s28  ;;  %s2712_s27 = sld [smem:[#allocation7 + $0x3f]]  ;;  %s1998_s28 = sld [smem:[#allocation7 + $0x46]] }
  0xfa   :  { %v154_v19 = vmul.f32 %v152_v13, %v2208_v24  ;;  %v696_v34 = vmul.f32 %v692_v12, %v2328_v38 }
  0xfd   :  { %461 = vrot.lane.b32.xlu1 %v452_v15, %s2125_s13  ;;  %459 = vrot.lane.b32.xlu0 %v451_v16, %s2125_s13  ;;  %v694_v16 = vmul.f32 %v692_v12, %v2320_v33 }
 0x101   :  { %465 = vrot.lane.b32.xlu1 %v454_v17, %s2125_s13  ;;  %463 = vrot.lane.b32.xlu0 %v453_v18, %s2125_s13  ;;  %v693_v17 = vmul.f32 %v692_v12, %v2322_v35  ;;  %v153_v18 = vmul.f32 %v152_v13, %v2202_v20 }
 0x105   :  { %487 = vrot.lane.b32.xlu1 %v478_v21, %s2125_s13  ;;  %485 = vrot.lane.b32.xlu0 %v477_v22, %s2125_s13  ;;  %v342_v21 = vstv %s1957_s29  ;;  %s1999_s29 = sld [smem:[#allocation7 + $0x11]] }
 0x106   :  { %v345_v3 = vmul.f32 %v342_v21, %v2274_v1 }
 0x109   :  { %491 = vrot.lane.b32.xlu1 %v480_v23, %s2125_s13  ;;  %489 = vrot.lane.b32.xlu0 %v479_v25, %s2125_s13  ;;  %v162_v25 = vstv %s1949_s30  ;;  %s2000_s30 = sld [smem:[#allocation7 + $0x2c]] }
 0x10d   :  { %513 = vrot.lane.b32.xlu1 %v504_v27, %s2125_s13  ;;  %511 = vrot.lane.b32.xlu0 %v503_v30, %s2125_s13  ;;  %v156_v27 = vmul.f32 %v152_v13, %v2216_v28  ;;  %v155_v30 = vmul.f32 %v152_v13, %v2218_v29 }
 0x111   :  { %517 = vrot.lane.b32.xlu1 %v506_v31, %s2125_s13  ;;  %515 = vrot.lane.b32.xlu0 %v505_v32, %s2125_s13 }
 0x115   :  { %573 = vrot.lane.b32.xlu1 %v564_v36, %s2124_s8  ;;  %571 = vrot.lane.b32.xlu0 %v563_v37, %s2124_s8  ;;  %v695_v36 = vmul.f32 %v692_v12, %v2330_v39 }
 0x119   :  { %577 = vrot.lane.b32.xlu1 %v566_v40, %s2124_s8  ;;  %575 = vrot.lane.b32.xlu0 %v565_v41, %s2124_s8  ;;  %v2404_v41 = vld [vmem:[#allocation2 + $0x20] sm:$0xff] }
 0x11a   :  { %v755_v54 = vmul.f32 %v753_v26, %v2404_v41 }
 0x11d   :  { %599 = vrot.lane.b32.xlu1 %v590_v43, %s2124_s8  ;;  %597 = vrot.lane.b32.xlu0 %v589_v44, %s2124_s8  ;;  %v344_v43 = vmul.f32 %v342_v21, %v2264_v59  ;;  %v343_v44 = vmul.f32 %v342_v21, %v2266_v61 }
 0x11f   :  { %v192_v50 = vpop.permute.xlu0 %191 }
 0x120   :  { %v203_v22 = vadd.f32 %v192_v50, %v153_v18  ;;  %v164_v50 = vmul.f32 %v162_v25, %v2208_v24 }
 0x121   :  { %603 = vrot.lane.b32.xlu1 %v592_v45, %s2124_s8  ;;  %601 = vrot.lane.b32.xlu0 %v591_v46, %s2124_s8  ;;  %v2410_v45 = vstv %s1950_s5  ;;  %s1984_s5 = sld [smem:[#allocation7 + $0xc]] }
 0x123   :  { %v194_v51 = vpop.permute.xlu1 %193 }
 0x124   :  { %v204_v23 = vadd.f32 %v194_v51, %v154_v19  ;;  %v163_v51 = vmul.f32 %v162_v25, %v2202_v20 }
 0x125   :  { %625 = vrot.lane.b32.xlu1 %v616_v48, %s2124_s8  ;;  %623 = vrot.lane.b32.xlu0 %v615_v49, %s2124_s8 }
 0x129   :  { %629 = vrot.lane.b32.xlu1 %v618_v52, %s2124_s8  ;;  %627 = vrot.lane.b32.xlu0 %v617_v53, %s2124_s8 }
 0x12b   :  { %v2354_v55 = vpop.permute.xlu1 %197  ;;  %v2356_v56 = vpop.permute.xlu0 %195 }
 0x12c   :  { %v206_v46 = vadd.f32 %v2354_v55, %v156_v27  ;;  %v205_v47 = vadd.f32 %v2356_v56, %v155_v30  ;;  %v2426_v56 = vld [vmem:[#allocation2 + $0x60] sm:$0xff] }
 0x12d   :  { %651 = vrot.lane.b32.xlu1 %v642_v57, %s2125_s13  ;;  %649 = vrot.lane.b32.xlu0 %v641_v58, %s2125_s13  ;;  %v754_v57 = vmul.f32 %v753_v26, %v2406_v42 }
 0x12f   :  { %v2362_v60 = vpop.permute.xlu1 %219  ;;  %v2364_v62 = vpop.permute.xlu0 %217 }
 0x131   :  { %655 = vrot.lane.b32.xlu1 %v644_v63, %s2125_s13  ;;  %653 = vrot.lane.b32.xlu0 %v643_v2, %s2125_s13  ;;  %v2424_v63 = vld [vmem:[#allocation2 + $0x68] sm:$0xff]  ;;  %v346_v2 = vmul.f32 %v342_v21, %v2272_v0 }
 0x132   :  { %v757_v21 = vmul.f32 %v753_v26, %v2424_v63 }
 0x133   :  { %v2370_v4 = vpop.permute.xlu1 %223  ;;  %v2372_v5 = vpop.permute.xlu0 %221 }
 0x135   :  { %677 = vrot.lane.b32.xlu1 %v668_v6, %s2125_s13  ;;  %675 = vrot.lane.b32.xlu0 %v667_v7, %s2125_s13  ;;  %v779_v6 = vstv %s2396_s6  ;;  %v352_v7 = vstv %s2398_s0  ;;  %s2005_s6 = sld [smem:[#allocation7 + $0x13]]  ;;  %s2816_s0 = sld [smem:[#allocation7 + $0x27]] }
 0x137   :  { %v2378_v8 = vpop.permute.xlu1 %245  ;;  %v2380_v9 = vpop.permute.xlu0 %243 }
 0x139   :  { %681 = vrot.lane.b32.xlu1 %v670_v10, %s2125_s13  ;;  %679 = vrot.lane.b32.xlu0 %v669_v11, %s2125_s13  ;;  %v230_v10 = vadd.f32 %v2362_v60, %v164_v50  ;;  %v229_v11 = vadd.f32 %v2364_v62, %v163_v51  ;;  %v354_v60 = vmul.f32 %v352_v7, %v2264_v59 }
 0x13a   :  { %v353_v62 = vmul.f32 %v352_v7, %v2266_v61 }
 0x13b   :  { %v2386_v14 = vpop.permute.xlu1 %249  ;;  %v2388_v15 = vpop.permute.xlu0 %247 }
 0x13d   :  { %703 = vrot.lane.b32.xlu1 %v694_v16, %s2125_s13  ;;  %701 = vrot.lane.b32.xlu0 %v693_v17, %s2125_s13  ;;  %v166_v16 = vmul.f32 %v162_v25, %v2216_v28  ;;  %v165_v17 = vmul.f32 %v162_v25, %v2218_v29 }
 0x13f   :  { %v272_v31 = vpop.permute.xlu1 %271  ;;  %v270_v32 = vpop.permute.xlu0 %269  ;;  %v232_v30 = vadd.f32 %v2370_v4, %v166_v16  ;;  %v231_v25 = vadd.f32 %v2372_v5, %v165_v17  ;;  %v780_v4 = vmul.f32 %v779_v6, %v2406_v42  ;;  %v356_v5 = vmul.f32 %v352_v7, %v2272_v0 }
 0x140   :  { %v282_v37 = vadd.f32 %v272_v31, %v204_v23  ;;  %v281_v40 = vadd.f32 %v270_v32, %v203_v22  ;;  %v756_v22 = vmul.f32 %v753_v26, %v2426_v56  ;;  %v174_v26 = vmul.f32 %v2410_v45, %v2208_v24 }
 0x141   :  { %707 = vrot.lane.b32.xlu1 %v696_v34, %s2125_s13  ;;  %705 = vrot.lane.b32.xlu0 %v695_v36, %s2125_s13  ;;  %v173_v34 = vmul.f32 %v2410_v45, %v2202_v20  ;;  %v805_v24 = vstv %s2433_s2  ;;  %s2822_s2 = sld [smem:[#allocation7 + $0x2e]] }
 0x142   :  { %v2416_v48 = vadd.f32 %v344_v43, %v282_v37  ;;  %v2418_v49 = vadd.f32 %v343_v44, %v281_v40  ;;  %v781_v40 = vmul.f32 %v779_v6, %v2404_v41  ;;  %v256_v20 = vadd.f32 %v2378_v8, %v174_v26 }
 0x143   :  { %v276_v52 = vpop.permute.xlu1 %275  ;;  %v274_v53 = vpop.permute.xlu0 %273  ;;  %v255_v50 = vadd.f32 %v2380_v9, %v173_v34  ;;  %v807_v16 = vmul.f32 %v805_v24, %v2404_v41 }
 0x144   :  { %v284_v58 = vadd.f32 %v276_v52, %v206_v46  ;;  %v283_v55 = vadd.f32 %v274_v53, %v205_v47  ;;  %v355_v46 = vmul.f32 %v352_v7, %v2274_v1  ;;  %v362_v47 = vstv %s2436_s7  ;;  %s2849_s7 = sld [smem:[#allocation7 + $0x42]] }
 0x145   :  { %764 = vrot.lane.b32.xlu1 %v755_v54, %s2124_s8  ;;  %762 = vrot.lane.b32.xlu0 %v754_v57, %s2124_s8  ;;  %v176_v53 = vmul.f32 %v2410_v45, %v2216_v28  ;;  %v175_v54 = vmul.f32 %v2410_v45, %v2218_v29  ;;  %v364_v9 = vmul.f32 %v362_v47, %v2264_v59 }
 0x146   :  { %v2440_v12 = vadd.f32 %v346_v2, %v284_v58  ;;  %v2442_v13 = vadd.f32 %v345_v3, %v283_v55  ;;  %v783_v55 = vmul.f32 %v779_v6, %v2424_v63  ;;  %v782_v2 = vmul.f32 %v779_v6, %v2426_v56 }
 0x147   :  { %v298_v18 = vpop.permute.xlu1 %297  ;;  %v296_v19 = vpop.permute.xlu0 %295  ;;  %v363_v7 = vmul.f32 %v362_v47, %v2266_v61  ;;  %v258_v28 = vadd.f32 %v2386_v14, %v176_v53  ;;  %v257_v29 = vadd.f32 %v2388_v15, %v175_v54  ;;  %v806_v59 = vmul.f32 %v805_v24, %v2406_v42 }
 0x148   :  { %v308_v23 = vadd.f32 %v298_v18, %v230_v10  ;;  %v307_v27 = vadd.f32 %v296_v19, %v229_v11  ;;  %v366_v18 = vmul.f32 %v362_v47, %v2272_v0  ;;  %v365_v19 = vmul.f32 %v362_v47, %v2274_v1 }
 0x149   :  { %768 = vrot.lane.b32.xlu1 %v757_v21, %s2124_s8  ;;  %766 = vrot.lane.b32.xlu0 %v756_v22, %s2124_s8 }
 0x14a   :  { %v2454_v31 = vadd.f32 %v354_v60, %v308_v23  ;;  %v2456_v32 = vadd.f32 %v353_v62, %v307_v27  ;;  %v809_v23 = vmul.f32 %v805_v24, %v2424_v63  ;;  %v808_v27 = vmul.f32 %v805_v24, %v2426_v56 }
 0x14b   :  { %v302_v36 = vpop.permute.xlu1 %301  ;;  %v300_v37 = vpop.permute.xlu0 %299  ;;  %v831_v60 = vstv %s1981_s9  ;;  %s2007_s9 = sld [smem:[#allocation7 + $0x49]] }
 0x14c   :  { %v310_v43 = vadd.f32 %v302_v36, %v232_v30  ;;  %v309_v44 = vadd.f32 %v300_v37, %v231_v25  ;;  %v833_v62 = vmul.f32 %v831_v60, %v2404_v41  ;;  %v832_v30 = vmul.f32 %v831_v60, %v2406_v42 }
 0x14d   :  { %790 = vrot.lane.b32.xlu1 %v781_v40, %s2124_s8  ;;  %788 = vrot.lane.b32.xlu0 %v780_v4, %s2124_s8  ;;  %v835_v34 = vmul.f32 %v831_v60, %v2424_v63  ;;  %v834_v36 = vmul.f32 %v831_v60, %v2426_v56  ;;  %v857_v37 = vstv %s1982_s10  ;;  %s2008_s10 = sld [smem:[#allocation7 + $0x14]] }
 0x14e   :  { %v2472_v51 = vadd.f32 %v356_v5, %v310_v43  ;;  %v2474_v52 = vadd.f32 %v355_v46, %v309_v44  ;;  %v859_v43 = vmul.f32 %v857_v37, %v2404_v41  ;;  %v858_v44 = vmul.f32 %v857_v37, %v2406_v42 }
 0x14f   :  { %v324_v57 = vpop.permute.xlu1 %323  ;;  %v322_v58 = vpop.permute.xlu0 %321  ;;  %v861_v24 = vmul.f32 %v857_v37, %v2424_v63  ;;  %v860_v47 = vmul.f32 %v857_v37, %v2426_v56 }
 0x150   :  { %v334_v3 = vadd.f32 %v324_v57, %v256_v20  ;;  %v333_v8 = vadd.f32 %v322_v58, %v255_v50  ;;  %v883_v20 = vstv %s1983_s11  ;;  %v532_v58 = vstv %s1966_s12  ;;  %s2009_s11 = sld [smem:[#allocation7 + $0x2f]]  ;;  %s2010_s12 = sld [smem:[#allocation7 + $0x4a]] }
 0x151   :  { %794 = vrot.lane.b32.xlu1 %v783_v55, %s2124_s8  ;;  %792 = vrot.lane.b32.xlu0 %v782_v2, %s2124_s8  ;;  %v885_v54 = vmul.f32 %v883_v20, %v2404_v41  ;;  %v884_v57 = vmul.f32 %v883_v20, %v2406_v42 }
 0x152   :  { %v2488_v45 = vadd.f32 %v364_v9, %v334_v3  ;;  %v2490_v10 = vadd.f32 %v363_v7, %v333_v8  ;;  %v887_v9 = vmul.f32 %v883_v20, %v2424_v63  ;;  %v886_v7 = vmul.f32 %v883_v20, %v2426_v56 }
 0x153   :  { %v328_v6 = vpop.permute.xlu1 %327  ;;  %v326_v11 = vpop.permute.xlu0 %325  ;;  %v969_v20 = vstv %s2548_s16  ;;  %s2953_s16 = sld [smem:[#allocation7 + $0x2a]] }
 0x154   :  { %v336_v17 = vadd.f32 %v328_v6, %v258_v28  ;;  %v335_v61 = vadd.f32 %v326_v11, %v257_v29  ;;  %v943_v28 = vstv %s1987_s14  ;;  %v2550_v11 = vld [vmem:[#allocation2 + $0x21] sm:$0xff]  ;;  %s1993_s14 = sld [smem:[#allocation7 + $0xf]] }
 0x155   :  { %816 = vrot.lane.b32.xlu1 %v807_v16, %s2124_s8  ;;  %814 = vrot.lane.b32.xlu0 %v806_v59, %s2124_s8  ;;  %v2552_v16 = vld [vmem:[#allocation2 + $0x19] sm:$0xff]  ;;  %v534_v59 = vmul.f32 %v532_v58, %v2320_v33 }
 0x156   :  { %v2498_v14 = vadd.f32 %v366_v18, %v336_v17  ;;  %v2500_v15 = vadd.f32 %v365_v19, %v335_v61 }
 0x157   :  { %v384_v21 = vpop.permute.xlu1 %383  ;;  %v382_v22 = vpop.permute.xlu0 %381 }
 0x158   :  { %v394_v55 = vadd.f32 %v384_v21, %v2416_v48  ;;  %v393_v2 = vadd.f32 %v382_v22, %v2418_v49  ;;  %v533_v48 = vmul.f32 %v532_v58, %v2322_v35  ;;  %v945_v22 = vmul.f32 %v943_v28, %v2550_v11 }
 0x159   :  { %820 = vrot.lane.b32.xlu1 %v809_v23, %s2124_s8  ;;  %818 = vrot.lane.b32.xlu0 %v808_v27, %s2124_s8  ;;  %v944_v23 = vmul.f32 %v943_v28, %v2552_v16 }
 0x15b   :  { %v388_v0 = vpop.permute.xlu1 %387  ;;  %v386_v1 = vpop.permute.xlu0 %385 }
 0x15c   :  { %v396_v49 = vadd.f32 %v388_v0, %v2440_v12  ;;  %v395_v17 = vadd.f32 %v386_v1, %v2442_v13  ;;  %v536_v12 = vmul.f32 %v532_v58, %v2328_v38  ;;  %v535_v13 = vmul.f32 %v532_v58, %v2330_v39 }
 0x15d   :  { %842 = vrot.lane.b32.xlu1 %v833_v62, %s2125_s13  ;;  %840 = vrot.lane.b32.xlu0 %v832_v30, %s2125_s13  ;;  %v2566_v62 = vld [vmem:[#allocation2 + $0x69] sm:$0xff]  ;;  %v2568_v30 = vld [vmem:[#allocation2 + $0x61] sm:$0xff]  ;;  %v542_v0 = vstv %s2542_s15  ;;  %s2014_s15 = sld [smem:[#allocation7 + $0x16]] }
 0x15e   :  { %v544_v58 = vmul.f32 %v542_v0, %v2320_v33 }
 0x15f   :  { %v2510_v25 = vpop.permute.xlu1 %409  ;;  %v2512_v26 = vpop.permute.xlu0 %407 }
 0x160   :  { %v420_v1 = vadd.f32 %v2510_v25, %v2454_v31  ;;  %v543_v31 = vmul.f32 %v542_v0, %v2322_v35 }
 0x161   :  { %846 = vrot.lane.b32.xlu1 %v835_v34, %s2125_s13  ;;  %844 = vrot.lane.b32.xlu0 %v834_v36, %s2125_s13  ;;  %v419_v34 = vadd.f32 %v2512_v26, %v2456_v32 }
 0x163   :  { %v2518_v40 = vpop.permute.xlu1 %413  ;;  %v2520_v4 = vpop.permute.xlu0 %411 }
 0x164   :  { %v422_v32 = vadd.f32 %v2518_v40, %v2472_v51  ;;  %v421_v25 = vadd.f32 %v2520_v4, %v2474_v52  ;;  %v552_v51 = vstv %s2575_s17  ;;  %s2959_s17 = sld [smem:[#allocation7 + $0x31]] }
 0x165   :  { %868 = vrot.lane.b32.xlu1 %v859_v43, %s2125_s13  ;;  %866 = vrot.lane.b32.xlu0 %v858_v44, %s2125_s13 }
 0x167   :  { %v2526_v5 = vpop.permute.xlu1 %435  ;;  %v2528_v46 = vpop.permute.xlu0 %433 }
 0x168   :  { %v446_v52 = vadd.f32 %v2526_v5, %v2488_v45  ;;  %v445_v40 = vadd.f32 %v2528_v46, %v2490_v10  ;;  %v553_v45 = vmul.f32 %v552_v51, %v2322_v35 }
 0x169   :  { %872 = vrot.lane.b32.xlu1 %v861_v24, %s2125_s13  ;;  %870 = vrot.lane.b32.xlu0 %v860_v47, %s2125_s13  ;;  %v947_v24 = vmul.f32 %v943_v28, %v2566_v62  ;;  %v946_v47 = vmul.f32 %v943_v28, %v2568_v30 }
 0x16b   :  { %v2534_v50 = vpop.permute.xlu1 %439  ;;  %v2536_v53 = vpop.permute.xlu0 %437 }
 0x16c   :  { %v448_v10 = vadd.f32 %v2534_v50, %v2498_v14  ;;  %v447_v5 = vadd.f32 %v2536_v53, %v2500_v15 }
 0x16d   :  { %894 = vrot.lane.b32.xlu1 %v885_v54, %s2125_s13  ;;  %892 = vrot.lane.b32.xlu0 %v884_v57, %s2125_s13 }
 0x16f   :  { %v462_v3 = vpop.permute.xlu1 %461  ;;  %v460_v8 = vpop.permute.xlu0 %459 }
 0x170   :  { %v472_v29 = vadd.f32 %v462_v3, %v394_v55  ;;  %v471_v6 = vadd.f32 %v460_v8, %v393_v2  ;;  %v971_v8 = vmul.f32 %v969_v20, %v2550_v11 }
 0x171   :  { %898 = vrot.lane.b32.xlu1 %v887_v9, %s2125_s13  ;;  %896 = vrot.lane.b32.xlu0 %v886_v7, %s2125_s13  ;;  %v970_v9 = vmul.f32 %v969_v20, %v2552_v16 }
 0x172   :  { %v2560_v61 = vadd.f32 %v534_v59, %v472_v29  ;;  %v2562_v18 = vadd.f32 %v533_v48, %v471_v6  ;;  %v546_v29 = vmul.f32 %v542_v0, %v2328_v38  ;;  %v545_v6 = vmul.f32 %v542_v0, %v2330_v39 }
 0x173   :  { %v466_v19 = vpop.permute.xlu1 %465  ;;  %v464_v21 = vpop.permute.xlu0 %463 }
 0x174   :  { %v474_v27 = vadd.f32 %v466_v19, %v396_v49  ;;  %v473_v60 = vadd.f32 %v464_v21, %v395_v17  ;;  %v973_v17 = vmul.f32 %v969_v20, %v2566_v62  ;;  %v972_v19 = vmul.f32 %v969_v20, %v2568_v30 }
 0x175   :  { %954 = vrot.lane.b32.xlu1 %v945_v22, %s2124_s8  ;;  %952 = vrot.lane.b32.xlu0 %v944_v23, %s2124_s8  ;;  %v995_v21 = vstv %s1989_s18  ;;  %s2986_s18 = sld [smem:[#allocation7 + $0x45]] }
 0x176   :  { %v2581_v36 = vadd.f32 %v536_v12, %v474_v27  ;;  %v2583_v37 = vadd.f32 %v535_v13, %v473_v60  ;;  %v554_v27 = vmul.f32 %v552_v51, %v2320_v33  ;;  %v997_v33 = vmul.f32 %v995_v21, %v2550_v11 }
 0x177   :  { %v488_v43 = vpop.permute.xlu1 %487  ;;  %v486_v44 = vpop.permute.xlu0 %485  ;;  %v996_v35 = vmul.f32 %v995_v21, %v2552_v16 }
 0x178   :  { %v498_v54 = vadd.f32 %v488_v43, %v420_v1  ;;  %v497_v57 = vadd.f32 %v486_v44, %v419_v34  ;;  %v556_v34 = vmul.f32 %v552_v51, %v2328_v38  ;;  %v555_v43 = vmul.f32 %v552_v51, %v2330_v39 }
 0x179   :  { %958 = vrot.lane.b32.xlu1 %v947_v24, %s2124_s8  ;;  %956 = vrot.lane.b32.xlu0 %v946_v47, %s2124_s8  ;;  %v999_v44 = vmul.f32 %v995_v21, %v2566_v62  ;;  %v998_v24 = vmul.f32 %v995_v21, %v2568_v30  ;;  %v1021_v47 = vstv %s1990_s19  ;;  %v1073_v51 = vstv %s1992_s21  ;;  %s2016_s19 = sld [smem:[#allocation7 + $0x4c]]  ;;  %s2018_s21 = sld [smem:[#allocation7 + $0x32]] }
 0x17a   :  { %v2596_v26 = vadd.f32 %v544_v58, %v498_v54  ;;  %v2598_v55 = vadd.f32 %v543_v31, %v497_v57  ;;  %v1023_v20 = vmul.f32 %v1021_v47, %v2550_v11  ;;  %v1022_v54 = vmul.f32 %v1021_v47, %v2552_v16 }
 0x17b   :  { %v492_v2 = vpop.permute.xlu1 %491  ;;  %v490_v3 = vpop.permute.xlu0 %489  ;;  %v1025_v31 = vmul.f32 %v1021_v47, %v2566_v62 }
 0x17c   :  { %v500_v7 = vadd.f32 %v492_v2, %v422_v32  ;;  %v499_v28 = vadd.f32 %v490_v3, %v421_v25  ;;  %v1024_v32 = vmul.f32 %v1021_v47, %v2568_v30  ;;  %v1047_v25 = vstv %s1991_s20  ;;  %s2017_s20 = sld [smem:[#allocation7 + $0x17]] }
 0x17d   :  { %980 = vrot.lane.b32.xlu1 %v971_v8, %s2124_s8  ;;  %978 = vrot.lane.b32.xlu0 %v970_v9, %s2124_s8  ;;  %v1049_v8 = vmul.f32 %v1047_v25, %v2550_v11  ;;  %v1048_v9 = vmul.f32 %v1047_v25, %v2552_v16 }
 0x17e   :  { %v2611_v4 = vadd.f32 %v546_v29, %v500_v7  ;;  %v2613_v59 = vadd.f32 %v545_v6, %v499_v28  ;;  %v1051_v29 = vmul.f32 %v1047_v25, %v2566_v62  ;;  %v1050_v6 = vmul.f32 %v1047_v25, %v2568_v30 }
 0x17f   :  { %v514_v48 = vpop.permute.xlu1 %513  ;;  %v512_v49 = vpop.permute.xlu0 %511 }
 0x180   :  { %v524_v22 = vadd.f32 %v514_v48, %v446_v52  ;;  %v523_v23 = vadd.f32 %v512_v49, %v445_v40  ;;  %v1075_v48 = vmul.f32 %v1073_v51, %v2550_v11  ;;  %v1074_v49 = vmul.f32 %v1073_v51, %v2552_v16 }
 0x181   :  { %984 = vrot.lane.b32.xlu1 %v973_v17, %s2124_s8  ;;  %982 = vrot.lane.b32.xlu0 %v972_v19, %s2124_s8  ;;  %v723_v17 = vstv %s1975_s22  ;;  %s2019_s22 = sld [smem:[#allocation7 + $0x4d]] }
 0x182   :  { %v2625_v46 = vadd.f32 %v554_v27, %v524_v22  ;;  %v2627_v60 = vadd.f32 %v553_v45, %v523_v23  ;;  %v1077_v27 = vmul.f32 %v1073_v51, %v2566_v62  ;;  %v1076_v45 = vmul.f32 %v1073_v51, %v2568_v30 }
 0x183   :  { %v518_v12 = vpop.permute.xlu1 %517  ;;  %v516_v13 = vpop.permute.xlu0 %515  ;;  %v1159_v51 = vstv %s2685_s26  ;;  %s2003_s26 = sld [smem:[#allocation7 + $0x2d]] }
 0x184   :  { %v526_v0 = vadd.f32 %v518_v12, %v448_v10  ;;  %v525_v1 = vadd.f32 %v516_v13, %v447_v5  ;;  %v1133_v10 = vstv %s1996_s23  ;;  %v2687_v13 = vld [vmem:[#allocation2 + $0x22] sm:$0xff]  ;;  %s2002_s23 = sld [smem:[#allocation7 + $0x12]] }
 0x185   :  { %1006 = vrot.lane.b32.xlu1 %v997_v33, %s2124_s8  ;;  %1004 = vrot.lane.b32.xlu0 %v996_v35, %s2124_s8  ;;  %v2689_v33 = vld [vmem:[#allocation2 + $0x1a] sm:$0xff]  ;;  %v725_v35 = vmul.f32 %v723_v17, %v2404_v41 }
 0x186   :  { %v2635_v14 = vadd.f32 %v556_v34, %v526_v0  ;;  %v2637_v15 = vadd.f32 %v555_v43, %v525_v1 }
 0x187   :  { %v574_v50 = vpop.permute.xlu1 %573  ;;  %v572_v53 = vpop.permute.xlu0 %571 }
 0x188   :  { %v584_v19 = vadd.f32 %v574_v50, %v2560_v61  ;;  %v583_v21 = vadd.f32 %v572_v53, %v2562_v18  ;;  %v724_v61 = vmul.f32 %v723_v17, %v2406_v42  ;;  %v1135_v53 = vmul.f32 %v1133_v10, %v2687_v13 }
 0x189   :  { %1010 = vrot.lane.b32.xlu1 %v999_v44, %s2124_s8  ;;  %1008 = vrot.lane.b32.xlu0 %v998_v24, %s2124_s8  ;;  %v1134_v44 = vmul.f32 %v1133_v10, %v2689_v33 }
 0x18b   :  { %v578_v38 = vpop.permute.xlu1 %577  ;;  %v576_v39 = vpop.permute.xlu0 %575 }
 0x18c   :  { %v586_v18 = vadd.f32 %v578_v38, %v2581_v36  ;;  %v585_v0 = vadd.f32 %v576_v39, %v2583_v37  ;;  %v727_v36 = vmul.f32 %v723_v17, %v2424_v63  ;;  %v726_v37 = vmul.f32 %v723_v17, %v2426_v56 }
 0x18d   :  { %1032 = vrot.lane.b32.xlu1 %v1023_v20, %s2125_s13  ;;  %1030 = vrot.lane.b32.xlu0 %v1022_v54, %s2125_s13  ;;  %v2703_v20 = vld [vmem:[#allocation2 + $0x6a] sm:$0xff]  ;;  %v2705_v54 = vld [vmem:[#allocation2 + $0x62] sm:$0xff]  ;;  %v733_v38 = vstv %s2679_s24  ;;  %s2023_s24 = sld [smem:[#allocation7 + $0x19]] }
 0x18e   :  { %v735_v17 = vmul.f32 %v733_v38, %v2404_v41 }
 0x18f   :  { %v2647_v57 = vpop.permute.xlu1 %599  ;;  %v2649_v58 = vpop.permute.xlu0 %597 }
 0x190   :  { %v610_v39 = vadd.f32 %v2647_v57, %v2596_v26  ;;  %v734_v26 = vmul.f32 %v733_v38, %v2406_v42 }
 0x191   :  { %1036 = vrot.lane.b32.xlu1 %v1025_v31, %s2125_s13  ;;  %1034 = vrot.lane.b32.xlu0 %v1024_v32, %s2125_s13  ;;  %v609_v31 = vadd.f32 %v2649_v58, %v2598_v55 }
 0x193   :  { %v2655_v2 = vpop.permute.xlu1 %603  ;;  %v2657_v3 = vpop.permute.xlu0 %601 }
 0x194   :  { %v612_v55 = vadd.f32 %v2655_v2, %v2611_v4  ;;  %v611_v57 = vadd.f32 %v2657_v3, %v2613_v59  ;;  %v743_v4 = vstv %s2712_s27  ;;  %s3090_s27 = sld [smem:[#allocation7 + $0x34]] }
 0x195   :  { %1058 = vrot.lane.b32.xlu1 %v1049_v8, %s2125_s13  ;;  %1056 = vrot.lane.b32.xlu0 %v1048_v9, %s2125_s13 }
 0x197   :  { %v2663_v7 = vpop.permute.xlu1 %625  ;;  %v2665_v28 = vpop.permute.xlu0 %623 }
 0x198   :  { %v636_v59 = vadd.f32 %v2663_v7, %v2625_v46  ;;  %v635_v2 = vadd.f32 %v2665_v28, %v2627_v60  ;;  %v744_v46 = vmul.f32 %v743_v4, %v2406_v42 }
 0x199   :  { %1062 = vrot.lane.b32.xlu1 %v1051_v29, %s2125_s13  ;;  %1060 = vrot.lane.b32.xlu0 %v1050_v6, %s2125_s13  ;;  %v1137_v29 = vmul.f32 %v1133_v10, %v2703_v20  ;;  %v1136_v6 = vmul.f32 %v1133_v10, %v2705_v54 }
 0x19b   :  { %v2671_v52 = vpop.permute.xlu1 %629  ;;  %v2673_v40 = vpop.permute.xlu0 %627 }
 0x19c   :  { %v638_v60 = vadd.f32 %v2671_v52, %v2635_v14  ;;  %v637_v7 = vadd.f32 %v2673_v40, %v2637_v15 }
 0x19d   :  { %1084 = vrot.lane.b32.xlu1 %v1075_v48, %s2125_s13  ;;  %1082 = vrot.lane.b32.xlu0 %v1074_v49, %s2125_s13 }
 0x19f   :  { %v652_v22 = vpop.permute.xlu1 %651  ;;  %v650_v23 = vpop.permute.xlu0 %649 }
 0x1a0   :  { %v662_v5 = vadd.f32 %v652_v22, %v584_v19  ;;  %v661_v12 = vadd.f32 %v650_v23, %v583_v21  ;;  %v1161_v23 = vmul.f32 %v1159_v51, %v2687_v13 }
 0x1a1   :  { %1088 = vrot.lane.b32.xlu1 %v1077_v27, %s2125_s13  ;;  %1086 = vrot.lane.b32.xlu0 %v1076_v45, %s2125_s13  ;;  %v1160_v27 = vmul.f32 %v1159_v51, %v2689_v33 }
 0x1a2   :  { %v2697_v1 = vadd.f32 %v725_v35, %v662_v5  ;;  %v2699_v34 = vadd.f32 %v724_v61, %v661_v12  ;;  %v737_v5 = vmul.f32 %v733_v38, %v2424_v63  ;;  %v736_v12 = vmul.f32 %v733_v38, %v2426_v56 }
 0x1a3   :  { %v656_v43 = vpop.permute.xlu1 %655  ;;  %v654_v50 = vpop.permute.xlu0 %653 }
 0x1a4   :  { %v664_v24 = vadd.f32 %v656_v43, %v586_v18  ;;  %v663_v47 = vadd.f32 %v654_v50, %v585_v0  ;;  %v1163_v0 = vmul.f32 %v1159_v51, %v2703_v20  ;;  %v1162_v43 = vmul.f32 %v1159_v51, %v2705_v54 }
 0x1a5   :  { %1144 = vrot.lane.b32.xlu1 %v1135_v53, %s2124_s8  ;;  %1142 = vrot.lane.b32.xlu0 %v1134_v44, %s2124_s8  ;;  %v1185_v50 = vstv %s1998_s28  ;;  %s2004_s28 = sld [smem:[#allocation7 + $0x48]] }
 0x1a6   :  { %v2718_v32 = vadd.f32 %v727_v36, %v664_v24  ;;  %v2720_v25 = vadd.f32 %v726_v37, %v663_v47  ;;  %v745_v24 = vmul.f32 %v743_v4, %v2404_v41  ;;  %v1187_v41 = vmul.f32 %v1185_v50, %v2687_v13 }
 0x1a7   :  { %v678_v8 = vpop.permute.xlu1 %677  ;;  %v676_v9 = vpop.permute.xlu0 %675  ;;  %v1186_v42 = vmul.f32 %v1185_v50, %v2689_v33 }
 0x1a8   :  { %v688_v48 = vadd.f32 %v678_v8, %v610_v39  ;;  %v687_v49 = vadd.f32 %v676_v9, %v609_v31  ;;  %v747_v31 = vmul.f32 %v743_v4, %v2424_v63  ;;  %v746_v8 = vmul.f32 %v743_v4, %v2426_v56 }
 0x1a9   :  { %1148 = vrot.lane.b32.xlu1 %v1137_v29, %s2124_s8  ;;  %1146 = vrot.lane.b32.xlu0 %v1136_v6, %s2124_s8  ;;  %v1189_v9 = vmul.f32 %v1185_v50, %v2703_v20  ;;  %v1188_v29 = vmul.f32 %v1185_v50, %v2705_v54  ;;  %v1211_v6 = vstv %s1999_s29  ;;  %v1263_v4 = vstv %s2001_s4  ;;  %s2025_s29 = sld [smem:[#allocation7 + $0x4f]]  ;;  %s2027_s4 = sld [smem:[#allocation7 + $0x35]] }
 0x1aa   :  { %v2733_v58 = vadd.f32 %v735_v17, %v688_v48  ;;  %v2735_v19 = vadd.f32 %v734_v26, %v687_v49  ;;  %v1213_v51 = vmul.f32 %v1211_v6, %v2687_v13  ;;  %v1212_v48 = vmul.f32 %v1211_v6, %v2689_v33 }
 0x1ab   :  { %v682_v21 = vpop.permute.xlu1 %681  ;;  %v680_v22 = vpop.permute.xlu0 %679  ;;  %v1215_v26 = vmul.f32 %v1211_v6, %v2703_v20 }
 0x1ac   :  { %v690_v45 = vadd.f32 %v682_v21, %v612_v55  ;;  %v689_v10 = vadd.f32 %v680_v22, %v611_v57  ;;  %v1214_v55 = vmul.f32 %v1211_v6, %v2705_v54  ;;  %v1237_v57 = vstv %s2000_s30  ;;  %s2026_s30 = sld [smem:[#allocation7 + $0x1a]] }
 0x1ad   :  { %1170 = vrot.lane.b32.xlu1 %v1161_v23, %s2124_s8  ;;  %1168 = vrot.lane.b32.xlu0 %v1160_v27, %s2124_s8  ;;  %v1239_v23 = vmul.f32 %v1237_v57, %v2687_v13  ;;  %v1238_v27 = vmul.f32 %v1237_v57, %v2689_v33 }
 0x1ae   :  { %v2748_v3 = vadd.f32 %v737_v5, %v690_v45  ;;  %v2750_v35 = vadd.f32 %v736_v12, %v689_v10  ;;  %v1241_v5 = vmul.f32 %v1237_v57, %v2703_v20  ;;  %v1240_v12 = vmul.f32 %v1237_v57, %v2705_v54 }
 0x1af   :  { %v704_v61 = vpop.permute.xlu1 %703  ;;  %v702_v18 = vpop.permute.xlu0 %701 }
 0x1b0   :  { %v714_v53 = vadd.f32 %v704_v61, %v636_v59  ;;  %v713_v44 = vadd.f32 %v702_v18, %v635_v2  ;;  %v1265_v61 = vmul.f32 %v1263_v4, %v2687_v13  ;;  %v1264_v18 = vmul.f32 %v1263_v4, %v2689_v33 }
 0x1b1   :  { %1174 = vrot.lane.b32.xlu1 %v1163_v0, %s2124_s8  ;;  %1172 = vrot.lane.b32.xlu0 %v1162_v43, %s2124_s8  ;;  %v913_v0 = vstv %s1984_s5  ;;  %s2011_s5 = sld [smem:[#allocation7 + $0x15]] }
 0x1b2   :  { %v2762_v28 = vadd.f32 %v745_v24, %v714_v53  ;;  %v2764_v47 = vadd.f32 %v744_v46, %v713_v44  ;;  %v1267_v24 = vmul.f32 %v1263_v4, %v2703_v20  ;;  %v1266_v46 = vmul.f32 %v1263_v4, %v2705_v54 }
 0x1b3   :  { %v708_v36 = vpop.permute.xlu1 %707  ;;  %v706_v37 = vpop.permute.xlu0 %705  ;;  %v1350_v4 = vstv %s2822_s2  ;;  %s2021_s2 = sld [smem:[#allocation7 + $0x33]] }
 0x1b4   :  { %v716_v38 = vadd.f32 %v708_v36, %v638_v60  ;;  %v715_v39 = vadd.f32 %v706_v37, %v637_v7  ;;  %v1324_v60 = vstv %s2005_s6  ;;  %v2824_v37 = vld [vmem:[#allocation2 + $0x38] sm:$0xff]  ;;  %s2012_s6 = sld [smem:[#allocation7 + $0x30]] }
 0x1b5   :  { %1196 = vrot.lane.b32.xlu1 %v1187_v41, %s2124_s8  ;;  %1194 = vrot.lane.b32.xlu0 %v1186_v42, %s2124_s8  ;;  %v2826_v41 = vld [vmem:[#allocation2 + $0x30] sm:$0xff]  ;;  %v915_v42 = vmul.f32 %v913_v0, %v2550_v11 }
 0x1b6   :  { %v2772_v14 = vadd.f32 %v747_v31, %v716_v38  ;;  %v2774_v15 = vadd.f32 %v746_v8, %v715_v39 }
 0x1b7   :  { %v765_v52 = vpop.permute.xlu1 %764  ;;  %v763_v40 = vpop.permute.xlu0 %762 }
 0x1b8   :  { %v775_v43 = vadd.f32 %v765_v52, %v2697_v1  ;;  %v774_v50 = vadd.f32 %v763_v40, %v2699_v34  ;;  %v914_v1 = vmul.f32 %v913_v0, %v2552_v16  ;;  %v1326_v40 = vmul.f32 %v1324_v60, %v2824_v37 }
 0x1b9   :  { %1200 = vrot.lane.b32.xlu1 %v1189_v9, %s2124_s8  ;;  %1198 = vrot.lane.b32.xlu0 %v1188_v29, %s2124_s8  ;;  %v1325_v9 = vmul.f32 %v1324_v60, %v2826_v41 }
 0x1bb   :  { %v769_v63 = vpop.permute.xlu1 %768  ;;  %v767_v56 = vpop.permute.xlu0 %766 }
 0x1bc   :  { %v777_v34 = vadd.f32 %v769_v63, %v2718_v32  ;;  %v776_v38 = vadd.f32 %v767_v56, %v2720_v25  ;;  %v917_v32 = vmul.f32 %v913_v0, %v2566_v62  ;;  %v916_v25 = vmul.f32 %v913_v0, %v2568_v30 }
 0x1bd   :  { %1222 = vrot.lane.b32.xlu1 %v1213_v51, %s2125_s13  ;;  %1220 = vrot.lane.b32.xlu0 %v1212_v48, %s2125_s13  ;;  %v2840_v51 = vld [vmem:[#allocation2 + $0x80] sm:$0xff]  ;;  %v2842_v48 = vld [vmem:[#allocation2 + $0x78] sm:$0xff]  ;;  %v923_v63 = vstv %s2816_s0  ;;  %s2013_s0 = sld [smem:[#allocation7 + $0x4b]] }
 0x1be   :  { %v925_v0 = vmul.f32 %v923_v63, %v2550_v11 }
 0x1bf   :  { %v2784_v49 = vpop.permute.xlu1 %790  ;;  %v2786_v17 = vpop.permute.xlu0 %788 }
 0x1c0   :  { %v801_v56 = vadd.f32 %v2784_v49, %v2733_v58  ;;  %v924_v58 = vmul.f32 %v923_v63, %v2552_v16 }
 0x1c1   :  { %1226 = vrot.lane.b32.xlu1 %v1215_v26, %s2125_s13  ;;  %1224 = vrot.lane.b32.xlu0 %v1214_v55, %s2125_s13  ;;  %v800_v26 = vadd.f32 %v2786_v17, %v2735_v19 }
 0x1c3   :  { %v2792_v21 = vpop.permute.xlu1 %794  ;;  %v2794_v22 = vpop.permute.xlu0 %792 }
 0x1c4   :  { %v803_v19 = vadd.f32 %v2792_v21, %v2748_v3  ;;  %v802_v49 = vadd.f32 %v2794_v22, %v2750_v35  ;;  %v933_v3 = vstv %s2849_s7  ;;  %s2022_s7 = sld [smem:[#allocation7 + $0x4e]] }
 0x1c5   :  { %1248 = vrot.lane.b32.xlu1 %v1239_v23, %s2125_s13  ;;  %1246 = vrot.lane.b32.xlu0 %v1238_v27, %s2125_s13 }
 0x1c7   :  { %v2800_v45 = vpop.permute.xlu1 %816  ;;  %v2802_v10 = vpop.permute.xlu0 %814 }
 0x1c8   :  { %v827_v35 = vadd.f32 %v2800_v45, %v2762_v28  ;;  %v826_v21 = vadd.f32 %v2802_v10, %v2764_v47  ;;  %v934_v28 = vmul.f32 %v933_v3, %v2552_v16 }
 0x1c9   :  { %1252 = vrot.lane.b32.xlu1 %v1241_v5, %s2125_s13  ;;  %1250 = vrot.lane.b32.xlu0 %v1240_v12, %s2125_s13  ;;  %v1328_v5 = vmul.f32 %v1324_v60, %v2840_v51  ;;  %v1327_v12 = vmul.f32 %v1324_v60, %v2842_v48 }
 0x1cb   :  { %v2808_v59 = vpop.permute.xlu1 %820  ;;  %v2810_v2 = vpop.permute.xlu0 %818 }
 0x1cc   :  { %v829_v47 = vadd.f32 %v2808_v59, %v2772_v14  ;;  %v828_v45 = vadd.f32 %v2810_v2, %v2774_v15 }
 0x1cd   :  { %1274 = vrot.lane.b32.xlu1 %v1265_v61, %s2125_s13  ;;  %1272 = vrot.lane.b32.xlu0 %v1264_v18, %s2125_s13 }
 0x1cf   :  { %v843_v53 = vpop.permute.xlu1 %842  ;;  %v841_v44 = vpop.permute.xlu0 %840 }
 0x1d0   :  { %v853_v7 = vadd.f32 %v843_v53, %v775_v43  ;;  %v852_v36 = vadd.f32 %v841_v44, %v774_v50  ;;  %v1352_v44 = vmul.f32 %v1350_v4, %v2824_v37 }
 0x1d1   :  { %1278 = vrot.lane.b32.xlu1 %v1267_v24, %s2125_s13  ;;  %1276 = vrot.lane.b32.xlu0 %v1266_v46, %s2125_s13  ;;  %v1351_v24 = vmul.f32 %v1350_v4, %v2826_v41 }
 0x1d2   :  { %v2834_v39 = vadd.f32 %v915_v42, %v853_v7  ;;  %v2836_v31 = vadd.f32 %v914_v1, %v852_v36  ;;  %v927_v7 = vmul.f32 %v923_v63, %v2566_v62  ;;  %v926_v36 = vmul.f32 %v923_v63, %v2568_v30 }
 0x1d3   :  { %v847_v8 = vpop.permute.xlu1 %846  ;;  %v845_v52 = vpop.permute.xlu0 %844 }
 0x1d4   :  { %v855_v29 = vadd.f32 %v847_v8, %v777_v34  ;;  %v854_v6 = vadd.f32 %v845_v52, %v776_v38  ;;  %v1354_v38 = vmul.f32 %v1350_v4, %v2840_v51  ;;  %v1353_v8 = vmul.f32 %v1350_v4, %v2842_v48 }
 0x1d5   :  { %1335 = vrot.lane.b32.xlu1 %v1326_v40, %s2124_s8  ;;  %1333 = vrot.lane.b32.xlu0 %v1325_v9, %s2124_s8  ;;  %v1376_v52 = vstv %s2007_s9  ;;  %s1859_s9 = sld [smem:[#allocation8]] }
 0x1d6   :  { %v2855_v55 = vadd.f32 %v917_v32, %v855_v29  ;;  %v2857_v57 = vadd.f32 %v916_v25, %v854_v6  ;;  %v935_v29 = vmul.f32 %v933_v3, %v2550_v11  ;;  %v1378_v11 = vmul.f32 %v1376_v52, %v2824_v37 }
 0x1d7   :  { %v869_v23 = vpop.permute.xlu1 %868  ;;  %v867_v27 = vpop.permute.xlu0 %866  ;;  %v1377_v16 = vmul.f32 %v1376_v52, %v2826_v41 }
 0x1d8   :  { %v879_v61 = vadd.f32 %v869_v23, %v801_v56  ;;  %v878_v18 = vadd.f32 %v867_v27, %v800_v26  ;;  %v937_v26 = vmul.f32 %v933_v3, %v2566_v62  ;;  %v936_v23 = vmul.f32 %v933_v3, %v2568_v30 }
 0x1d9   :  { %1339 = vrot.lane.b32.xlu1 %v1328_v5, %s2124_s8  ;;  %1337 = vrot.lane.b32.xlu0 %v1327_v12, %s2124_s8  ;;  %v1380_v27 = vmul.f32 %v1376_v52, %v2840_v51  ;;  %v1379_v5 = vmul.f32 %v1376_v52, %v2842_v48  ;;  %v1402_v12 = vstv %s2008_s10  ;;  %v1454_v3 = vstv %s2010_s12  ;;  %s2029_s10 = sld [smem:[#allocation8 + $0x1]]  ;;  %s2126_s12 = smov [#allocation10]  }
 0x1da   :  { %v2870_v17 = vadd.f32 %v925_v0, %v879_v61  ;;  %v2872_v43 = vadd.f32 %v924_v58, %v878_v18  ;;  %v1404_v4 = vmul.f32 %v1402_v12, %v2824_v37  ;;  %v1403_v61 = vmul.f32 %v1402_v12, %v2826_v41 }
 0x1db   :  { %v873_v50 = vpop.permute.xlu1 %872  ;;  %v871_v53 = vpop.permute.xlu0 %870  ;;  %v1406_v58 = vmul.f32 %v1402_v12, %v2840_v51 }
 0x1dc   :  { %v881_v46 = vadd.f32 %v873_v50, %v803_v19  ;;  %v880_v60 = vadd.f32 %v871_v53, %v802_v49  ;;  %v1405_v19 = vmul.f32 %v1402_v12, %v2842_v48  ;;  %v1428_v49 = vstv %s2009_s11  ;;  %s3231_s11 = sld [smem:[#allocation8 + $0x2]] }
 0x1dd   :  { %1361 = vrot.lane.b32.xlu1 %v1352_v44, %s2124_s8  ;;  %1359 = vrot.lane.b32.xlu0 %v1351_v24, %s2124_s8  ;;  %v1430_v44 = vmul.f32 %v1428_v49, %v2824_v37  ;;  %v1429_v24 = vmul.f32 %v1428_v49, %v2826_v41 }
 0x1de   :  { %v2885_v22 = vadd.f32 %v927_v7, %v881_v46  ;;  %v2887_v42 = vadd.f32 %v926_v36, %v880_v60  ;;  %v1432_v7 = vmul.f32 %v1428_v49, %v2840_v51  ;;  %v1431_v36 = vmul.f32 %v1428_v49, %v2842_v48 }
 0x1df   :  { %v895_v1 = vpop.permute.xlu1 %894  ;;  %v893_v34 = vpop.permute.xlu0 %892 }
 0x1e0   :  { %v905_v40 = vadd.f32 %v895_v1, %v827_v35  ;;  %v904_v9 = vadd.f32 %v893_v34, %v826_v21  ;;  %v1456_v1 = vmul.f32 %v1454_v3, %v2824_v37  ;;  %v1455_v34 = vmul.f32 %v1454_v3, %v2826_v41 }
 0x1e1   :  { %1365 = vrot.lane.b32.xlu1 %v1354_v38, %s2124_s8  ;;  %1363 = vrot.lane.b32.xlu0 %v1353_v8, %s2124_s8  ;;  %v1103_v38 = vstv %s1993_s14  ;;  %s1935_s14 = sshll.u32 %s2126_s12, 4  ;;  %s1936_s14 = int_to_ptr.vmem [resolvable:$true] %s1935_s14 }
 0x1e2   :  { %v2899_v10 = vadd.f32 %v935_v29, %v905_v40  ;;  %v2901_v6 = vadd.f32 %v934_v28, %v904_v9  ;;  %v1458_v29 = vmul.f32 %v1454_v3, %v2840_v51  ;;  %v1457_v28 = vmul.f32 %v1454_v3, %v2842_v48  ;;  %p2092_p5 = scmp.lt.s32.totalorder %s1936_s14, %s1936_s14 }
 0x1e3   :  { %v899_v32 = vpop.permute.xlu1 %898  ;;  %v897_v25 = vpop.permute.xlu0 %896  ;;  %v1540_v3 = vstv %s2959_s17 }
 0x1e4   :  { %v907_v63 = vadd.f32 %v899_v32, %v829_v47  ;;  %v906_v56 = vadd.f32 %v897_v25, %v828_v45  ;;  %v1514_v47 = vstv %s2014_s15  ;;  %v2961_v25 = vld [vmem:[#allocation2 + $0x39] sm:$0xff]  ;;  %s2087_s15 = scalar_lea.vmem %s1936_s14, 1536 }
 0x1e5   :  { %1387 = vrot.lane.b32.xlu1 %v1378_v11, %s2124_s8  ;;  %1385 = vrot.lane.b32.xlu0 %v1377_v16, %s2124_s8  ;;  %v2963_v11 = vld [vmem:[#allocation2 + $0x31] sm:$0xff]  ;;  %v1105_v16 = vmul.f32 %v1103_v38, %v2687_v13  ;;  %p2088_p4 = scmp.ne.s32.totalorder %s1936_s14, %s2087_s15  ;;  %p2093_p6 = scmp.lt.s32.totalorder %s2087_s15, %s2087_s15 }
 0x1e6   :  { %v2909_v14 = vadd.f32 %v937_v26, %v907_v63  ;;  %v2911_v15 = vadd.f32 %v936_v23, %v906_v56 }
 0x1e7   :  { %v955_v59 = vpop.permute.xlu1 %954  ;;  %v953_v2 = vpop.permute.xlu0 %952  ;;  %p2094_p7 = por %p2093_p6, %p2092_p5 }
 0x1e8   :  { %v965_v8 = vadd.f32 %v955_v59, %v2834_v39  ;;  %v964_v52 = vadd.f32 %v953_v2, %v2836_v31  ;;  %v1104_v39 = vmul.f32 %v1103_v38, %v2689_v33  ;;  %v1516_v2 = vmul.f32 %v1514_v47, %v2961_v25 }
 0x1e9   :  { %1391 = vrot.lane.b32.xlu1 %v1380_v27, %s2124_s8  ;;  %1389 = vrot.lane.b32.xlu0 %v1379_v5, %s2124_s8  ;;  %v1515_v27 = vmul.f32 %v1514_v47, %v2963_v11  ;;  %p2095_p8 = pnand %p2094_p7, %p2088_p4 }
 0x1eb   :  { %v959_v62 = vpop.permute.xlu1 %958  ;;  %v957_v30 = vpop.permute.xlu0 %956 }
 0x1ec   :  { %v967_v31 = vadd.f32 %v959_v62, %v2855_v55  ;;  %v966_v63 = vadd.f32 %v957_v30, %v2857_v57  ;;  %v1107_v55 = vmul.f32 %v1103_v38, %v2703_v20  ;;  %v1106_v57 = vmul.f32 %v1103_v38, %v2705_v54 }
 0x1ed   :  { %1413 = vrot.lane.b32.xlu1 %v1404_v4, %s2125_s13  ;;  %1411 = vrot.lane.b32.xlu0 %v1403_v61, %s2125_s13  ;;  %v2977_v4 = vld [vmem:[#allocation2 + $0x81] sm:$0xff]  ;;  %v2979_v61 = vld [vmem:[#allocation2 + $0x79] sm:$0xff]  ;;  %v1113_v62 = vstv %s2953_s16 }
 0x1ee   :  { %v1115_v38 = vmul.f32 %v1113_v62, %v2687_v13 }
 0x1ef   :  { %v2921_v18 = vpop.permute.xlu1 %980  ;;  %v2923_v0 = vpop.permute.xlu0 %978 }
 0x1f0   :  { %v991_v30 = vadd.f32 %v2921_v18, %v2870_v17  ;;  %v1114_v17 = vmul.f32 %v1113_v62, %v2689_v33 }
 0x1f1   :  { %1417 = vrot.lane.b32.xlu1 %v1406_v58, %s2125_s13  ;;  %1415 = vrot.lane.b32.xlu0 %v1405_v19, %s2125_s13  ;;  %v990_v58 = vadd.f32 %v2923_v0, %v2872_v43 }
 0x1f3   :  { %v2929_v50 = vpop.permute.xlu1 %984  ;;  %v2931_v53 = vpop.permute.xlu0 %982 }
 0x1f4   :  { %v993_v43 = vadd.f32 %v2929_v50, %v2885_v22  ;;  %v992_v18 = vadd.f32 %v2931_v53, %v2887_v42  ;;  %v1123_v22 = vstv %s2986_s18 }
 0x1f5   :  { %1439 = vrot.lane.b32.xlu1 %v1430_v44, %s2125_s13  ;;  %1437 = vrot.lane.b32.xlu0 %v1429_v24, %s2125_s13 }
 0x1f7   :  { %v2937_v46 = vpop.permute.xlu1 %1006  ;;  %v2939_v60 = vpop.permute.xlu0 %1004 }
 0x1f8   :  { %v1017_v42 = vadd.f32 %v2937_v46, %v2899_v10  ;;  %v1016_v50 = vadd.f32 %v2939_v60, %v2901_v6 }
 0x1f9   :  { %1443 = vrot.lane.b32.xlu1 %v1432_v7, %s2125_s13  ;;  %1441 = vrot.lane.b32.xlu0 %v1431_v36, %s2125_s13  ;;  %v1518_v7 = vmul.f32 %v1514_v47, %v2977_v4  ;;  %v1517_v36 = vmul.f32 %v1514_v47, %v2979_v61 }
 0x1fb   :  { %v2945_v35 = vpop.permute.xlu1 %1010  ;;  %v2947_v21 = vpop.permute.xlu0 %1008 }
 0x1fc   :  { %v1019_v10 = vadd.f32 %v2945_v35, %v2909_v14  ;;  %v1018_v6 = vadd.f32 %v2947_v21, %v2911_v15 }
 0x1fd   :  { %1465 = vrot.lane.b32.xlu1 %v1456_v1, %s2125_s13  ;;  %1463 = vrot.lane.b32.xlu0 %v1455_v34, %s2125_s13 }
 0x1ff   :  { %v1033_v40 = vpop.permute.xlu1 %1032  ;;  %v1031_v9 = vpop.permute.xlu0 %1030 }
 0x200   :  { %v1043_v45 = vadd.f32 %v1033_v40, %v965_v8  ;;  %v1042_v32 = vadd.f32 %v1031_v9, %v964_v52  ;;  %v1542_v9 = vmul.f32 %v1540_v3, %v2961_v25 }
 0x201   :  { %1469 = vrot.lane.b32.xlu1 %v1458_v29, %s2125_s13  ;;  %1467 = vrot.lane.b32.xlu0 %v1457_v28, %s2125_s13  ;;  %v1541_v29 = vmul.f32 %v1540_v3, %v2963_v11 }
 0x202   :  { %v2971_v56 = vadd.f32 %v1105_v16, %v1043_v45  ;;  %v2973_v26 = vadd.f32 %v1104_v39, %v1042_v32  ;;  %v1117_v45 = vmul.f32 %v1113_v62, %v2703_v20  ;;  %v1116_v32 = vmul.f32 %v1113_v62, %v2705_v54 }
 0x203   :  { %v1037_v23 = vpop.permute.xlu1 %1036  ;;  %v1035_v59 = vpop.permute.xlu0 %1034 }
 0x204   :  { %v1045_v5 = vadd.f32 %v1037_v23, %v967_v31  ;;  %v1044_v12 = vadd.f32 %v1035_v59, %v966_v63  ;;  %v1544_v63 = vmul.f32 %v1540_v3, %v2977_v4  ;;  %v1543_v23 = vmul.f32 %v1540_v3, %v2979_v61 }
 0x205   :  { %1525 = vrot.lane.b32.xlu1 %v1516_v2, %s2124_s8  ;;  %1523 = vrot.lane.b32.xlu0 %v1515_v27, %s2124_s8  ;;  %v1566_v59 = vstv %s2016_s19 }
 0x206   :  { %v2992_v19 = vadd.f32 %v1107_v55, %v1045_v5  ;;  %v2994_v49 = vadd.f32 %v1106_v57, %v1044_v12  ;;  %v1125_v5 = vmul.f32 %v1123_v22, %v2687_v13  ;;  %v1124_v12 = vmul.f32 %v1123_v22, %v2689_v33 }
 0x207   :  { %v1059_v44 = vpop.permute.xlu1 %1058  ;;  %v1057_v24 = vpop.permute.xlu0 %1056  ;;  %v1568_v62 = vmul.f32 %v1566_v59, %v2961_v25  ;;  %v1567_v13 = vmul.f32 %v1566_v59, %v2963_v11 }
 0x208   :  { %v1069_v1 = vadd.f32 %v1059_v44, %v991_v30  ;;  %v1068_v34 = vadd.f32 %v1057_v24, %v990_v58  ;;  %v1127_v58 = vmul.f32 %v1123_v22, %v2703_v20  ;;  %v1126_v44 = vmul.f32 %v1123_v22, %v2705_v54 }
 0x209   :  { %1529 = vrot.lane.b32.xlu1 %v1518_v7, %s2124_s8  ;;  %1527 = vrot.lane.b32.xlu0 %v1517_v36, %s2124_s8  ;;  %v1570_v24 = vmul.f32 %v1566_v59, %v2977_v4  ;;  %v1569_v7 = vmul.f32 %v1566_v59, %v2979_v61 }
 0x20a   :  { %v3007_v0 = vadd.f32 %v1115_v38, %v1069_v1  ;;  %v3009_v8 = vadd.f32 %v1114_v17, %v1068_v34  ;;  %v1592_v1 = vstv %s2017_s20 }
 0x20b   :  { %v1063_v52 = vpop.permute.xlu1 %1062  ;;  %v1061_v40 = vpop.permute.xlu0 %1060  ;;  %v1594_v34 = vmul.f32 %v1592_v1, %v2961_v25  ;;  %v1593_v38 = vmul.f32 %v1592_v1, %v2963_v11 }
 0x20c   :  { %v1071_v28 = vadd.f32 %v1063_v52, %v993_v43  ;;  %v1070_v47 = vadd.f32 %v1061_v40, %v992_v18  ;;  %v1596_v18 = vmul.f32 %v1592_v1, %v2977_v4  ;;  %v1595_v52 = vmul.f32 %v1592_v1, %v2979_v61 }
 0x20d   :  { %1551 = vrot.lane.b32.xlu1 %v1542_v9, %s2124_s8  ;;  %1549 = vrot.lane.b32.xlu0 %v1541_v29, %s2124_s8 }
 0x20e   :  { %v1121_v53 = vadd.f32 %v1117_v45, %v1071_v28  ;;  %v1120_v16 = vadd.f32 %v1116_v32, %v1070_v47 }
 0x20f   :  { %v1085_v39 = vpop.permute.xlu1 %1084  ;;  %v1083_v31 = vpop.permute.xlu0 %1082 }
 0x210   :  { %v1095_v2 = vadd.f32 %v1085_v39, %v1017_v42  ;;  %v1094_v27 = vadd.f32 %v1083_v31, %v1016_v50 }
 0x211   :  { %1555 = vrot.lane.b32.xlu1 %v1544_v63, %s2124_s8  ;;  %1553 = vrot.lane.b32.xlu0 %v1543_v23, %s2124_s8 }
 0x212   :  { %v1129_v46 = vadd.f32 %v1125_v5, %v1095_v2  ;;  %v1128_v60 = vadd.f32 %v1124_v12, %v1094_v27  ;;  %v1294_v27 = vstv %s2002_s23 }
 0x213   :  { %v1089_v55 = vpop.permute.xlu1 %1088  ;;  %v1087_v57 = vpop.permute.xlu0 %1086  ;;  %v1297_v1 = vmul.f32 %v1294_v27, %v2842_v48 }
 0x214   :  { %v1097_v30 = vadd.f32 %v1089_v55, %v1019_v10  ;;  %v1096_v33 = vadd.f32 %v1087_v57, %v1018_v6  ;;  %v3092_v57 = vld [vmem:[#allocation2 + $0x3a] sm:$0xff] }
 0x215   :  { %1577 = vrot.lane.b32.xlu1 %v1568_v62, %s2124_s8  ;;  %1575 = vrot.lane.b32.xlu0 %v1567_v13, %s2124_s8  ;;  %v3094_v62 = vld [vmem:[#allocation2 + $0x32] sm:$0xff]  ;;  %v1296_v13 = vmul.f32 %v1294_v27, %v2824_v37 }
 0x216   :  { %v1131_v14 = vadd.f32 %v1127_v58, %v1097_v30  ;;  %v1130_v15 = vadd.f32 %v1126_v44, %v1096_v33  ;;  %v1295_v30 = vmul.f32 %v1294_v27, %v2826_v41 }
 0x217   :  { %v1145_v35 = vpop.permute.xlu1 %1144  ;;  %v1143_v21 = vpop.permute.xlu0 %1142 }
 0x218   :  { %v1155_v36 = vadd.f32 %v1145_v35, %v2971_v56  ;;  %v1154_v3 = vadd.f32 %v1143_v21, %v2973_v26 }
 0x219   :  { %1581 = vrot.lane.b32.xlu1 %v1570_v24, %s2124_s8  ;;  %1579 = vrot.lane.b32.xlu0 %v1569_v7, %s2124_s8  ;;  %v3108_v7 = vld [vmem:[#allocation2 + $0x82] sm:$0xff] }
 0x21b   :  { %v1149_v20 = vpop.permute.xlu1 %1148  ;;  %v1147_v54 = vpop.permute.xlu0 %1146 }
 0x21c   :  { %v3047_v17 = vadd.f32 %v1149_v20, %v2992_v19  ;;  %v3050_v43 = vadd.f32 %v1147_v54, %v2994_v49  ;;  %v1618_v19 = vstv %s2018_s21  ;;  %v1304_v20 = vstv %s2003_s26 }
 0x21d   :  { %1603 = vrot.lane.b32.xlu1 %v1594_v34, %s2125_s13  ;;  %1601 = vrot.lane.b32.xlu0 %v1593_v38, %s2125_s13  ;;  %v1620_v28 = vmul.f32 %v1618_v19, %v2961_v25  ;;  %v1619_v47 = vmul.f32 %v1618_v19, %v2963_v11  ;;  %v1622_v22 = vmul.f32 %v1618_v19, %v2977_v4 }
 0x21e   :  { %v1621_v42 = vmul.f32 %v1618_v19, %v2979_v61  ;;  %v1306_v19 = vmul.f32 %v1304_v20, %v2824_v37 }
 0x21f   :  { %v1171_v56 = vpop.permute.xlu1 %1170  ;;  %v1169_v26 = vpop.permute.xlu0 %1168 }
 0x220   :  { %v3057_v40 = vadd.f32 %v1171_v56, %v3007_v0  ;;  %v3060_v9 = vadd.f32 %v1169_v26, %v3009_v8  ;;  %v1730_v26 = vstv %s3090_s27 }
 0x221   :  { %1607 = vrot.lane.b32.xlu1 %v1596_v18, %s2125_s13  ;;  %1605 = vrot.lane.b32.xlu0 %v1595_v52, %s2125_s13 }
 0x223   :  { %v1175_v49 = vpop.permute.xlu1 %1174  ;;  %v1173_v29 = vpop.permute.xlu0 %1172 }
 0x224   :  { %v3066_v45 = vadd.f32 %v1175_v49, %v1121_v53  ;;  %v3068_v32 = vadd.f32 %v1173_v29, %v1120_v16  ;;  %v1644_v53 = vstv %s2019_s22  ;;  %v1305_v49 = vmul.f32 %v1304_v20, %v2826_v41 }
 0x225   :  { %1629 = vrot.lane.b32.xlu1 %v1620_v28, %s2125_s13  ;;  %1627 = vrot.lane.b32.xlu0 %v1619_v47, %s2125_s13  ;;  %v1646_v63 = vmul.f32 %v1644_v53, %v2961_v25  ;;  %v1645_v23 = vmul.f32 %v1644_v53, %v2963_v11  ;;  %v1648_v10 = vmul.f32 %v1644_v53, %v2977_v4 }
 0x226   :  { %v1647_v6 = vmul.f32 %v1644_v53, %v2979_v61  ;;  %v1307_v53 = vmul.f32 %v1304_v20, %v2842_v48 }
 0x227   :  { %v1197_v0 = vpop.permute.xlu1 %1196  ;;  %v1195_v8 = vpop.permute.xlu0 %1194 }
 0x228   :  { %v3074_v50 = vadd.f32 %v1197_v0, %v1129_v46  ;;  %v3076_v39 = vadd.f32 %v1195_v8, %v1128_v60  ;;  %v1704_v46 = vstv %s2023_s24  ;;  %v1732_v8 = vmul.f32 %v1730_v26, %v3092_v57 }
 0x229   :  { %1633 = vrot.lane.b32.xlu1 %v1622_v22, %s2125_s13  ;;  %1631 = vrot.lane.b32.xlu0 %v1621_v42, %s2125_s13  ;;  %v1705_v35 = vmul.f32 %v1704_v46, %v3094_v62  ;;  %v1308_v42 = vmul.f32 %v1304_v20, %v2840_v51  ;;  %v1782_v20 = vstv %s2026_s30 }
 0x22b   :  { %v1201_v16 = vpop.permute.xlu1 %1200  ;;  %v1199_v31 = vpop.permute.xlu0 %1198 }
 0x22c   :  { %v3082_v59 = vadd.f32 %v1201_v16, %v1131_v14  ;;  %v3084_v2 = vadd.f32 %v1199_v31, %v1130_v15  ;;  %v1706_v15 = vmul.f32 %v1704_v46, %v3092_v57  ;;  %v1314_v16 = vstv %s2004_s28 }
 0x22d   :  { %1655 = vrot.lane.b32.xlu1 %v1646_v63, %s2125_s13  ;;  %1653 = vrot.lane.b32.xlu0 %v1645_v23, %s2125_s13 }
 0x22f   :  { %v1223_v5 = vpop.permute.xlu1 %1222  ;;  %v1221_v12 = vpop.permute.xlu0 %1220 }
 0x230   :  { %v1233_v60 = vadd.f32 %v1223_v5, %v1155_v36  ;;  %v1232_v55 = vadd.f32 %v1221_v12, %v1154_v3  ;;  %v3110_v36 = vld [vmem:[#allocation2 + $0x7a] sm:$0xff]  ;;  %v1298_v3 = vmul.f32 %v1294_v27, %v2840_v51  ;;  %v1734_v5 = vmul.f32 %v1730_v26, %v3108_v7 }
 0x231   :  { %1659 = vrot.lane.b32.xlu1 %v1648_v10, %s2125_s13  ;;  %1657 = vrot.lane.b32.xlu0 %v1647_v6, %s2125_s13  ;;  %v1707_v56 = vmul.f32 %v1704_v46, %v3110_v36  ;;  %v1733_v12 = vmul.f32 %v1730_v26, %v3110_v36  ;;  %v1316_v6 = vmul.f32 %v1314_v16, %v2824_v37 }
 0x232   :  { %v3100_v33 = vadd.f32 %v1296_v13, %v1233_v60  ;;  %v3102_v58 = vadd.f32 %v1295_v30, %v1232_v55  ;;  %v1318_v37 = vmul.f32 %v1314_v16, %v2840_v51 }
 0x233   :  { %v1227_v44 = vpop.permute.xlu1 %1226  ;;  %v1225_v14 = vpop.permute.xlu0 %1224 }
 0x234   :  { %v1235_v21 = vadd.f32 %v1227_v44, %v3047_v17  ;;  %v1234_v24 = vadd.f32 %v1225_v14, %v3050_v43  ;;  %v1708_v43 = vmul.f32 %v1704_v46, %v3108_v7  ;;  %v1315_v46 = vmul.f32 %v1314_v16, %v2826_v41 }
 0x235   :  { %1715 = vrot.lane.b32.xlu1 %v1706_v15, %s2124_s8  ;;  %1713 = vrot.lane.b32.xlu0 %v1705_v35, %s2124_s8  ;;  %v1317_v41 = vmul.f32 %v1314_v16, %v2842_v48 }
 0x236   :  { %v3116_v54 = vadd.f32 %v1298_v3, %v1235_v21  ;;  %v3118_v34 = vadd.f32 %v1297_v1, %v1234_v24 }
 0x237   :  { %v1249_v38 = vpop.permute.xlu1 %1248  ;;  %v1247_v17 = vpop.permute.xlu0 %1246 }
 0x238   :  { %v1259_v18 = vadd.f32 %v1249_v38, %v3057_v40  ;;  %v1258_v52 = vadd.f32 %v1247_v17, %v3060_v9  ;;  %v1731_v40 = vmul.f32 %v1730_v26, %v3094_v62  ;;  %v1784_v38 = vmul.f32 %v1782_v20, %v3092_v57 }
 0x239   :  { %1719 = vrot.lane.b32.xlu1 %v1708_v43, %s2124_s8  ;;  %1717 = vrot.lane.b32.xlu0 %v1707_v56, %s2124_s8  ;;  %v1783_v17 = vmul.f32 %v1782_v20, %v3094_v62  ;;  %v1786_v26 = vmul.f32 %v1782_v20, %v3108_v7 }
 0x23a   :  { %v3129_v29 = vadd.f32 %v1306_v19, %v1259_v18  ;;  %v3131_v28 = vadd.f32 %v1305_v49, %v1258_v52  ;;  %v1785_v18 = vmul.f32 %v1782_v20, %v3110_v36  ;;  %v1808_v49 = vstv %s2027_s4 }
 0x23b   :  { %v1253_v47 = vpop.permute.xlu1 %1252  ;;  %v1251_v0 = vpop.permute.xlu0 %1250 }
 0x23c   :  { %v1261_v9 = vadd.f32 %v1253_v47, %v3066_v45  ;;  %v1260_v22 = vadd.f32 %v1251_v0, %v3068_v32  ;;  %v1756_v45 = vstv %s2025_s29  ;;  %v1810_v47 = vmul.f32 %v1808_v49, %v3092_v57 }
 0x23d   :  { %1741 = vrot.lane.b32.xlu1 %v1732_v8, %s2124_s8  ;;  %1739 = vrot.lane.b32.xlu0 %v1731_v40, %s2124_s8  ;;  %v1758_v44 = vmul.f32 %v1756_v45, %v3092_v57  ;;  %v1757_v14 = vmul.f32 %v1756_v45, %v3094_v62  ;;  %v1760_v3 = vmul.f32 %v1756_v45, %v3108_v7 }
 0x23e   :  { %v1312_v31 = vadd.f32 %v1308_v42, %v1261_v9  ;;  %v1311_v63 = vadd.f32 %v1307_v53, %v1260_v22  ;;  %v1759_v1 = vmul.f32 %v1756_v45, %v3110_v36  ;;  %v1809_v0 = vmul.f32 %v1808_v49, %v3094_v62 }
 0x23f   :  { %v1275_v23 = vpop.permute.xlu1 %1274  ;;  %v1273_v27 = vpop.permute.xlu0 %1272  ;;  %v1812_v9 = vmul.f32 %v1808_v49, %v3108_v7  ;;  %v1811_v22 = vmul.f32 %v1808_v49, %v3110_v36  ;;  %v1484_v45 = vstv %s2011_s5  ;;  %v1504_v49 = vstv %s2013_s0 }
 0x240   :  { %v1285_v32 = vadd.f32 %v1275_v23, %v3074_v50  ;;  %v1284_v10 = vadd.f32 %v1273_v27, %v3076_v39 }
 0x241   :  { %1745 = vrot.lane.b32.xlu1 %v1734_v5, %s2124_s8  ;;  %1743 = vrot.lane.b32.xlu0 %v1733_v12, %s2124_s8 }
 0x242   :  { %v1320_v60 = vadd.f32 %v1316_v6, %v1285_v32  ;;  %v1319_v55 = vadd.f32 %v1315_v46, %v1284_v10 }
 0x243   :  { %v1279_v13 = vpop.permute.xlu1 %1278  ;;  %v1277_v30 = vpop.permute.xlu0 %1276 }
 0x244   :  { %v1287_v50 = vadd.f32 %v1279_v13, %v3082_v59  ;;  %v1286_v39 = vadd.f32 %v1277_v30, %v3084_v2  ;;  %v1486_v13 = vmul.f32 %v1484_v45, %v2961_v25  ;;  %v1485_v30 = vmul.f32 %v1484_v45, %v2963_v11 }
 0x245   :  { %1767 = vrot.lane.b32.xlu1 %v1758_v44, %s2124_s8  ;;  %1765 = vrot.lane.b32.xlu0 %v1757_v14, %s2124_s8 }
 0x246   :  { %v1322_v15 = vadd.f32 %v1318_v37, %v1287_v50  ;;  %v1321_v35 = vadd.f32 %v1317_v41, %v1286_v39 }
 0x247   :  { %v1336_v21 = vpop.permute.xlu1 %1335  ;;  %v1334_v24 = vpop.permute.xlu0 %1333 }
 0x248   :  { %v1346_v59 = vadd.f32 %v1336_v21, %v3100_v33  ;;  %v1345_v2 = vadd.f32 %v1334_v24, %v3102_v58  ;;  %v1494_v21 = vstv %s2012_s6 }
 0x249   :  { %1771 = vrot.lane.b32.xlu1 %v1760_v3, %s2124_s8  ;;  %1769 = vrot.lane.b32.xlu0 %v1759_v1, %s2124_s8  ;;  %s2028_s8 = sld [smem:[#allocation7 + $0x50]] }
 0x24b   :  { %v1340_v51 = vpop.permute.xlu1 %1339  ;;  %v1338_v48 = vpop.permute.xlu0 %1337 }
 0x24c   :  { %v1348_v43 = vadd.f32 %v1340_v51, %v3116_v54  ;;  %v1347_v56 = vadd.f32 %v1338_v48, %v3118_v34  ;;  %v1496_v51 = vmul.f32 %v1494_v21, %v2961_v25  ;;  %v1495_v48 = vmul.f32 %v1494_v21, %v2963_v11 }
 0x24d   :  { %1793 = vrot.lane.b32.xlu1 %v1784_v38, %s2125_s13  ;;  %1791 = vrot.lane.b32.xlu0 %v1783_v17, %s2125_s13 }
 0x24f   :  { %v1362_v33 = vpop.permute.xlu1 %1361  ;;  %v1360_v58 = vpop.permute.xlu0 %1359  ;;  %v1834_v16 = vstv %s2028_s8 }
 0x250   :  { %v1372_v52 = vadd.f32 %v1362_v33, %v3129_v29  ;;  %v1371_v19 = vadd.f32 %v1360_v58, %v3131_v28  ;;  %v1836_v23 = vmul.f32 %v1834_v16, %v3092_v57  ;;  %v1835_v27 = vmul.f32 %v1834_v16, %v3094_v62 }
 0x251   :  { %1797 = vrot.lane.b32.xlu1 %v1786_v26, %s2125_s13  ;;  %1795 = vrot.lane.b32.xlu0 %v1785_v18, %s2125_s13  ;;  %v1838_v6 = vmul.f32 %v1834_v16, %v3108_v7  ;;  %v1837_v46 = vmul.f32 %v1834_v16, %v3110_v36  ;;  %v1498_v26 = vmul.f32 %v1494_v21, %v2977_v4 }
 0x252   :  { %v1497_v18 = vmul.f32 %v1494_v21, %v2979_v61 }
 0x253   :  { %v1366_v54 = vpop.permute.xlu1 %1365  ;;  %v1364_v34 = vpop.permute.xlu0 %1363 }
 0x254   :  { %v1374_v8 = vadd.f32 %v1366_v54, %v1312_v31  ;;  %v1373_v40 = vadd.f32 %v1364_v34, %v1311_v63 }
 0x255   :  { %1819 = vrot.lane.b32.xlu1 %v1810_v47, %s2125_s13  ;;  %1817 = vrot.lane.b32.xlu0 %v1809_v0, %s2125_s13 }
 0x257   :  { %v1388_v29 = vpop.permute.xlu1 %1387  ;;  %v1386_v28 = vpop.permute.xlu0 %1385 }
 0x258   :  { %v1398_v42 = vadd.f32 %v1388_v29, %v1320_v60  ;;  %v1397_v53 = vadd.f32 %v1386_v28, %v1319_v55  ;;  %v1506_v29 = vmul.f32 %v1504_v49, %v2961_v25  ;;  %v1505_v28 = vmul.f32 %v1504_v49, %v2963_v11 }
 0x259   :  { %1823 = vrot.lane.b32.xlu1 %v1812_v9, %s2125_s13  ;;  %1821 = vrot.lane.b32.xlu0 %v1811_v22, %s2125_s13 }
 0x25b   :  { %v1392_v31 = vpop.permute.xlu1 %1391  ;;  %v1390_v63 = vpop.permute.xlu0 %1389 }
 0x25c   :  { %v1400_v5 = vadd.f32 %v1392_v31, %v1322_v15  ;;  %v1399_v12 = vadd.f32 %v1390_v63, %v1321_v35  ;;  %v1488_v15 = vmul.f32 %v1484_v45, %v2977_v4  ;;  %v1487_v35 = vmul.f32 %v1484_v45, %v2979_v61 }
 0x25d   :  { %1845 = vrot.lane.b32.xlu1 %v1836_v23, %s2125_s13  ;;  %1843 = vrot.lane.b32.xlu0 %v1835_v27, %s2125_s13  ;;  %v1508_v63 = vmul.f32 %v1504_v49, %v2977_v4  ;;  %v1507_v23 = vmul.f32 %v1504_v49, %v2979_v61 }
 0x25f   :  { %v1414_v32 = vpop.permute.xlu1 %1413  ;;  %v1412_v10 = vpop.permute.xlu0 %1411 }
 0x260   :  { %v1424_v60 = vadd.f32 %v1414_v32, %v1346_v59  ;;  %v1423_v55 = vadd.f32 %v1412_v10, %v1345_v2 }
 0x261   :  { %1849 = vrot.lane.b32.xlu1 %v1838_v6, %s2125_s13  ;;  %1847 = vrot.lane.b32.xlu0 %v1837_v46, %s2125_s13  ;;  %s2020_s13 = sld [smem:[#allocation7 + $0x18]] }
 0x262   :  { %v1490_v44 = vadd.f32 %v1486_v13, %v1424_v60  ;;  %v1489_v14 = vadd.f32 %v1485_v30, %v1423_v55 }
 0x263   :  { %v1418_v50 = vpop.permute.xlu1 %1417  ;;  %v1416_v39 = vpop.permute.xlu0 %1415 }
 0x264   :  { %v1426_v37 = vadd.f32 %v1418_v50, %v1348_v43  ;;  %v1425_v41 = vadd.f32 %v1416_v39, %v1347_v56 }
 0x266   :  { %v1492_v24 = vadd.f32 %v1488_v15, %v1426_v37  ;;  %v1491_v3 = vadd.f32 %v1487_v35, %v1425_v41 }
 0x267   :  { %v1440_v1 = vpop.permute.xlu1 %1439  ;;  %v1438_v59 = vpop.permute.xlu0 %1437  ;;  %v1674_v21 = vstv %s2020_s13 }
 0x268   :  { %v1450_v2 = vadd.f32 %v1440_v1, %v1372_v52  ;;  %v1449_v20 = vadd.f32 %v1438_v59, %v1371_v19 }
 0x26a   :  { %v1500_v38 = vadd.f32 %v1496_v51, %v1450_v2  ;;  %v1499_v17 = vadd.f32 %v1495_v48, %v1449_v20  ;;  %v1676_v2 = vmul.f32 %v1674_v21, %v3092_v57  ;;  %v1675_v20 = vmul.f32 %v1674_v21, %v3094_v62 }
 0x26b   :  { %v1444_v43 = vpop.permute.xlu1 %1443  ;;  %v1442_v56 = vpop.permute.xlu0 %1441 }
 0x26c   :  { %v1452_v33 = vadd.f32 %v1444_v43, %v1374_v8  ;;  %v1451_v58 = vadd.f32 %v1442_v56, %v1373_v40 }
 0x26e   :  { %v1502_v54 = vadd.f32 %v1498_v26, %v1452_v33  ;;  %v1501_v34 = vadd.f32 %v1497_v18, %v1451_v58  ;;  %v1678_v33 = vmul.f32 %v1674_v21, %v3108_v7  ;;  %v1677_v58 = vmul.f32 %v1674_v21, %v3110_v36 }
 0x26f   :  { %v1466_v47 = vpop.permute.xlu1 %1465  ;;  %v1464_v52 = vpop.permute.xlu0 %1463  ;;  %v1684_v26 = vstv %s2021_s2 }
 0x270   :  { %v1476_v19 = vadd.f32 %v1466_v47, %v1398_v42  ;;  %v1475_v0 = vadd.f32 %v1464_v52, %v1397_v53 }
 0x272   :  { %v1510_v9 = vadd.f32 %v1506_v29, %v1476_v19  ;;  %v1509_v22 = vadd.f32 %v1505_v28, %v1475_v0  ;;  %v1686_v19 = vmul.f32 %v1684_v26, %v3092_v57  ;;  %v1685_v0 = vmul.f32 %v1684_v26, %v3094_v62 }
 0x273   :  { %v1470_v16 = vpop.permute.xlu1 %1469  ;;  %v1468_v8 = vpop.permute.xlu0 %1467 }
 0x274   :  { %v1478_v40 = vadd.f32 %v1470_v16, %v1400_v5  ;;  %v1477_v31 = vadd.f32 %v1468_v8, %v1399_v12 }
 0x276   :  { %v1512_v27 = vadd.f32 %v1508_v63, %v1478_v40  ;;  %v1511_v45 = vadd.f32 %v1507_v23, %v1477_v31  ;;  %v1688_v40 = vmul.f32 %v1684_v26, %v3108_v7  ;;  %v1687_v31 = vmul.f32 %v1684_v26, %v3110_v36 }
 0x277   :  { %v1526_v32 = vpop.permute.xlu1 %1525  ;;  %v1524_v10 = vpop.permute.xlu0 %1523  ;;  %v1694_v63 = vstv %s2022_s7 }
 0x278   :  { %v1536_v42 = vadd.f32 %v1526_v32, %v1490_v44  ;;  %v1535_v53 = vadd.f32 %v1524_v10, %v1489_v14 }
 0x27b   :  { %v1530_v6 = vpop.permute.xlu1 %1529  ;;  %v1528_v25 = vpop.permute.xlu0 %1527 }
 0x27c   :  { %v1538_v46 = vadd.f32 %v1530_v6, %v1492_v24  ;;  %v1537_v11 = vadd.f32 %v1528_v25, %v1491_v3  ;;  %v1695_v6 = vmul.f32 %v1694_v63, %v3094_v62 }
 0x27f   :  { %v1552_v60 = vpop.permute.xlu1 %1551  ;;  %v1550_v55 = vpop.permute.xlu0 %1549 }
 0x280   :  { %v1562_v13 = vadd.f32 %v1552_v60, %v1500_v38  ;;  %v1561_v30 = vadd.f32 %v1550_v55, %v1499_v17 }
 0x283   :  { %v1556_v5 = vpop.permute.xlu1 %1555  ;;  %v1554_v12 = vpop.permute.xlu0 %1553 }
 0x284   :  { %v1564_v50 = vadd.f32 %v1556_v5, %v1502_v54  ;;  %v1563_v4 = vadd.f32 %v1554_v12, %v1501_v34  ;;  %v1697_v5 = vmul.f32 %v1694_v63, %v3110_v36 }
 0x287   :  { %v1578_v61 = vpop.permute.xlu1 %1577  ;;  %v1576_v39 = vpop.permute.xlu0 %1575 }
 0x288   :  { %v1588_v37 = vadd.f32 %v1578_v61, %v1510_v9  ;;  %v1587_v41 = vadd.f32 %v1576_v39, %v1509_v22 }
 0x28b   :  { %v1582_v15 = vpop.permute.xlu1 %1581  ;;  %v1580_v44 = vpop.permute.xlu0 %1579 }
 0x28c   :  { %v1590_v14 = vadd.f32 %v1582_v15, %v1512_v27  ;;  %v1589_v35 = vadd.f32 %v1580_v44, %v1511_v45 }
 0x28f   :  { %v1604_v24 = vpop.permute.xlu1 %1603  ;;  %v1602_v3 = vpop.permute.xlu0 %1601 }
 0x290   :  { %v1614_v1 = vadd.f32 %v1604_v24, %v1536_v42  ;;  %v1613_v59 = vadd.f32 %v1602_v3, %v1535_v53  ;;  %v1696_v53 = vmul.f32 %v1694_v63, %v3092_v57  ;;  %v1860_v24 = vstv %s1859_s9 }
 0x292   :  { %v1680_v51 = vadd.f32 %v1676_v2, %v1614_v1  ;;  %v1679_v48 = vadd.f32 %v1675_v20, %v1613_v59 }
 0x293   :  { %v1608_v38 = vpop.permute.xlu1 %1607  ;;  %v1606_v17 = vpop.permute.xlu0 %1605 }
 0x294   :  { %v1616_v43 = vadd.f32 %v1608_v38, %v1538_v46  ;;  %v1615_v56 = vadd.f32 %v1606_v17, %v1537_v11 }
 0x296   :  { %v1682_v18 = vadd.f32 %v1678_v33, %v1616_v43  ;;  %v1681_v49 = vadd.f32 %v1677_v58, %v1615_v56  ;;  %v1870_v56 = vld [vmem:[#allocation3 + $0x8] sm:$0xff]  ;;  %v1869_v33 = vld [vmem:[#allocation3] sm:$0xff] }
 0x297   :  { %v1630_v54 = vpop.permute.xlu1 %1629  ;;  %v1628_v34 = vpop.permute.xlu0 %1627 }
 0x298   :  { %v1640_v47 = vadd.f32 %v1630_v54, %v1562_v13  ;;  %v1639_v52 = vadd.f32 %v1628_v34, %v1561_v30  ;;  %v1698_v30 = vmul.f32 %v1694_v63, %v3108_v7 }
 0x29a   :  { %v1690_v29 = vadd.f32 %v1686_v19, %v1640_v47  ;;  %v1689_v28 = vadd.f32 %v1685_v0, %v1639_v52 }
 0x29b   :  { %v1634_v9 = vpop.permute.xlu1 %1633  ;;  %v1632_v22 = vpop.permute.xlu0 %1631 }
 0x29c   :  { %v1642_v16 = vadd.f32 %v1634_v9, %v1564_v50  ;;  %v1641_v8 = vadd.f32 %v1632_v22, %v1563_v4 }
 0x29e   :  { %v3211_v23 = vadd.f32 %v1688_v40, %v1642_v16  ;;  %v3213_v27 = vadd.f32 %v1687_v31, %v1641_v8  ;;  %v1872_v16 = vld [vmem:[#allocation3 + $0x38] sm:$0xff] }
 0x29f   :  { %v1656_v45 = vpop.permute.xlu1 %1655  ;;  %v1654_v32 = vpop.permute.xlu0 %1653 }
 0x2a0   :  { %v1666_v10 = vadd.f32 %v1656_v45, %v1588_v37  ;;  %v1665_v42 = vadd.f32 %v1654_v32, %v1587_v41 }
 0x2a2   :  { %v3217_v25 = vadd.f32 %v1696_v53, %v1666_v10  ;;  %v3219_v46 = vadd.f32 %v1695_v6, %v1665_v42 }
 0x2a3   :  { %v1660_v11 = vpop.permute.xlu1 %1659  ;;  %v1658_v60 = vpop.permute.xlu0 %1657 }
 0x2a4   :  { %v1668_v55 = vadd.f32 %v1660_v11, %v1590_v14  ;;  %v1667_v13 = vadd.f32 %v1658_v60, %v1589_v35  ;;  %v1894_v11 = vld [vmem:[#allocation3 + $0x18] sm:$0xff]  ;;  %v1893_v60 = vld [vmem:[#allocation3 + $0x10] sm:$0xff] }
 0x2a6   :  { %v3223_v12 = vadd.f32 %v1698_v30, %v1668_v55  ;;  %v3225_v50 = vadd.f32 %v1697_v5, %v1667_v13 }
 0x2a7   :  { %v1716_v4 = vpop.permute.xlu1 %1715  ;;  %v1714_v57 = vpop.permute.xlu0 %1713 }
 0x2a8   :  { %v1726_v36 = vadd.f32 %v1716_v4, %v1680_v51  ;;  %v1725_v35 = vadd.f32 %v1714_v57, %v1679_v48 }
 0x2ab   :  { %v1720_v61 = vpop.permute.xlu1 %1719  ;;  %v1718_v62 = vpop.permute.xlu0 %1717 }
 0x2ac   :  { %v1728_v20 = vadd.f32 %v1720_v61, %v1682_v18  ;;  %v1727_v38 = vadd.f32 %v1718_v62, %v1681_v49  ;;  %v1871_v18 = vld [vmem:[#allocation3 + $0x30] sm:$0xff]  ;;  %v1883_v49 = vstv %s2029_s10 }
 0x2af   :  { %v1742_v39 = vpop.permute.xlu1 %1741  ;;  %v1740_v37 = vpop.permute.xlu0 %1739 }
 0x2b0   :  { %v1752_v51 = vadd.f32 %v1742_v39, %v1690_v29  ;;  %v1751_v48 = vadd.f32 %v1740_v37, %v1689_v28 }
 0x2b3   :  { %v1746_v41 = vpop.permute.xlu1 %1745  ;;  %v1744_v15 = vpop.permute.xlu0 %1743 }
 0x2b4   :  { %v1754_v45 = vadd.f32 %v1746_v41, %v3211_v23  ;;  %v1753_v32 = vadd.f32 %v1744_v15, %v3213_v27  ;;  %v1896_v41 = vld [vmem:[#allocation3 + $0x48] sm:$0xff]  ;;  %v1895_v15 = vld [vmem:[#allocation3 + $0x40] sm:$0xff] }
 0x2b7   :  { %v1768_v44 = vpop.permute.xlu1 %1767  ;;  %v1766_v21 = vpop.permute.xlu0 %1765 }
 0x2b8   :  { %v1778_v23 = vadd.f32 %v1768_v44, %v3217_v25  ;;  %v1777_v27 = vadd.f32 %v1766_v21, %v3219_v46 }
 0x2bb   :  { %v3227_v14 = vpop.permute.xlu1 %1771  ;;  %v3229_v7 = vpop.permute.xlu0 %1769 }
 0x2bc   :  { %v1780_v25 = vadd.f32 %v3227_v14, %v3223_v12  ;;  %v1779_v46 = vadd.f32 %v3229_v7, %v3225_v50  ;;  %v1920_v7 = vld [vmem:[#allocation3 + $0x58] sm:$0xff] }
 0x2bf   :  { %v1794_v3 = vpop.permute.xlu1 %1793  ;;  %v1792_v1 = vpop.permute.xlu0 %1791 }
 0x2c0   :  { %v1804_v59 = vadd.f32 %v1794_v3, %v1726_v36  ;;  %v1803_v2 = vadd.f32 %v1792_v1, %v1725_v35  ;;  %v1907_v36 = vstv %s3231_s11 }
 0x2c2   :  { %v1862_v17 = vadd.f32 %v1860_v24, %v1804_v59  ;;  %v1861_v43 = vadd.f32 %v1860_v24, %v1803_v2 }
 0x2c3   :  { %v1798_v58 = vpop.permute.xlu1 %1797  ;;  %v1796_v26 = vpop.permute.xlu0 %1795 }
 0x2c4   :  { %v1866_v54 = vmax.f32 %v1862_v17, 0.0  ;;  %v1865_v34 = vmax.f32 %v1861_v43, 0.0  ;;  %v1806_v47 = vadd.f32 %v1798_v58, %v1728_v20  ;;  %v1805_v52 = vadd.f32 %v1796_v26, %v1727_v38  ;;  %v1918_v17 = vld [vmem:[#allocation3 + $0x28] sm:$0xff]  ;;  %v1917_v43 = vld [vmem:[#allocation3 + $0x20] sm:$0xff] }
 0x2c6   :  { %v1874_v19 = vadd.f32 %v1870_v56, %v1866_v54  ;;  %v1873_v0 = vadd.f32 %v1869_v33, %v1865_v34  ;;  %v1864_v9 = vadd.f32 %v1860_v24, %v1806_v47  ;;  %v1863_v22 = vadd.f32 %v1860_v24, %v1805_v52  ;;  %v1919_v52 = vld [vmem:[#allocation3 + $0x50] sm:$0xff] }
 0x2c7   :  { %v1820_v8 = vpop.permute.xlu1 %1819  ;;  %v1818_v40 = vpop.permute.xlu0 %1817 }
 0x2c8   :  { %1879 = vst.msk [vmem:[#allocation10 + $0x8] sm:$0xff] %vm1877_vm3, %v1874_v19  ;;  %1878 = vst.msk [vmem:[#allocation10] sm:$0xff] %vm1877_vm3, %v1873_v0  ;;  %v1868_v31 = vmax.f32 %v1864_v9, 0.0  ;;  %v1867_v63 = vmax.f32 %v1863_v22, 0.0  ;;  %v1830_v29 = vadd.f32 %v1820_v8, %v1752_v51  ;;  %v1829_v28 = vadd.f32 %v1818_v40, %v1751_v48 }
 0x2ca   :  { %v1876_v10 = vadd.f32 %v1872_v16, %v1868_v31  ;;  %v1875_v42 = vadd.f32 %v1871_v18, %v1867_v63  ;;  %v1885_v53 = vadd.f32 %v1883_v49, %v1830_v29  ;;  %v1884_v6 = vadd.f32 %v1883_v49, %v1829_v28 }
 0x2cb   :  { %v1824_v55 = vpop.permute.xlu1 %1823  ;;  %v1822_v13 = vpop.permute.xlu0 %1821 }
 0x2cc   :  { %1881 = vst.msk [vmem:[#allocation10 + $0x38] sm:$0xff] %vm1877_vm3, %v1876_v10  ;;  %1880 = vst.msk [vmem:[#allocation10 + $0x30] sm:$0xff] %vm1877_vm3, %v1875_v42  ;;  %v1889_v30 = vmax.f32 %v1885_v53, 0.0  ;;  %v1888_v5 = vmax.f32 %v1884_v6, 0.0  ;;  %v1832_v4 = vadd.f32 %v1824_v55, %v1754_v45  ;;  %v1831_v57 = vadd.f32 %v1822_v13, %v1753_v32 }
 0x2ce   :  { %v1898_v61 = vadd.f32 %v1894_v11, %v1889_v30  ;;  %v1897_v62 = vadd.f32 %v1893_v60, %v1888_v5  ;;  %v1887_v39 = vadd.f32 %v1883_v49, %v1832_v4  ;;  %v1886_v37 = vadd.f32 %v1883_v49, %v1831_v57 }
 0x2cf   :  { %v1846_v35 = vpop.permute.xlu1 %1845  ;;  %v1844_v24 = vpop.permute.xlu0 %1843 }
 0x2d0   :  { %1903 = vst.msk [vmem:[#allocation10 + $0x18] sm:$0xff] %vm1877_vm3, %v1898_v61  ;;  %1902 = vst.msk [vmem:[#allocation10 + $0x10] sm:$0xff] %vm1877_vm3, %v1897_v62  ;;  %v1891_v3 = vmax.f32 %v1887_v39, 0.0  ;;  %v1890_v1 = vmax.f32 %v1886_v37, 0.0  ;;  %v1856_v59 = vadd.f32 %v1846_v35, %v1778_v23  ;;  %v1855_v2 = vadd.f32 %v1844_v24, %v1777_v27 }
 0x2d2   :  { %v1900_v44 = vadd.f32 %v1896_v41, %v1891_v3  ;;  %v1899_v21 = vadd.f32 %v1895_v15, %v1890_v1  ;;  %v1909_v20 = vadd.f32 %v1907_v36, %v1856_v59  ;;  %v1908_v38 = vadd.f32 %v1907_v36, %v1855_v2 }
 0x2d3   :  { %v1850_v56 = vpop.permute.xlu1 %1849  ;;  %v1848_v33 = vpop.permute.xlu0 %1847 }
 0x2d4   :  { %1905 = vst.msk [vmem:[#allocation10 + $0x48] sm:$0xff] %vm1877_vm3, %v1900_v44  ;;  %1904 = vst.msk [vmem:[#allocation10 + $0x40] sm:$0xff] %vm1877_vm3, %v1899_v21  ;;  %v1913_v58 = vmax.f32 %v1909_v20, 0.0  ;;  %v1912_v26 = vmax.f32 %v1908_v38, 0.0  ;;  %v1858_v54 = vadd.f32 %v1850_v56, %v1780_v25  ;;  %v1857_v34 = vadd.f32 %v1848_v33, %v1779_v46 }
 0x2d6   :  { %v1922_v12 = vadd.f32 %v1918_v17, %v1913_v58  ;;  %v1921_v14 = vadd.f32 %v1917_v43, %v1912_v26  ;;  %v1911_v47 = vadd.f32 %v1907_v36, %v1858_v54  ;;  %v1910_v50 = vadd.f32 %v1907_v36, %v1857_v34 }
 0x2d8   :  { %1927 = vst.msk [vmem:[#allocation10 + $0x28] sm:$0xff] %vm1877_vm3, %v1922_v12  ;;  %1926 = vst.msk [vmem:[#allocation10 + $0x20] sm:$0xff] %vm1877_vm3, %v1921_v14  ;;  %v1915_v51 = vmax.f32 %v1911_v47, 0.0  ;;  %v1914_v48 = vmax.f32 %v1910_v50, 0.0 }
 0x2da   :  { %v1924_v19 = vadd.f32 %v1920_v7, %v1915_v51  ;;  %v1923_v0 = vadd.f32 %v1919_v52, %v1914_v48 }
 0x2dc   :  { %1929 = vst.msk [vmem:[#allocation10 + $0x58] sm:$0xff] %vm1877_vm3, %v1924_v19  ;;  %1928 = vst.msk [vmem:[#allocation10 + $0x50] sm:$0xff] %vm1877_vm3, %v1923_v0 }
 0x2dd   :  { %2098 = shalt.err (!%p2095_p8)
}
 0x2de   :  { %s2099_s18 = scalar_lea.hbm %s3272_s3, 1536 }
 0x2df   :  { %p2100_p9 = scmp.ne.s32.totalorder %s3272_s3, %s2099_s18  ;;  %p2103_p10 = scmp.lt.u32.totalorder %s2099_s18, %s3272_s3 }
 0x2e1   :  { %p2105_p11 = pnand %p2103_p10, %p2100_p9 }
 0x2e3   :  { %2108 = shalt.err (!%p2105_p11)
}
 0x2e4   :  { %1941 = dma.vmem_to_hbm [thread:$0]  %s1936_s14, 1536, %s3272_s3, [#allocation5], %s2118_s1, %s2118_s1, %s2119_s25  }
 0x2e5   :  { %2115 = dma.done.wait [#allocation5], 1536  }
 0x2e6   :  { %2116 = vsyncadd [#allocation5], 4294965760 }
 0x2e7   :  { %1945 = vsyncpa [#allocation4], 1 }
 0x2e8   :  { %1946 = vsyncpa [#allocation5], 1 }
 0x2e9   :  { %1947 = vsyncpa [#allocation6], 1 }
 0x2ea   :  { %1948 = vsyncpa [#allocation9], 1 }

</bundles_post_ra>
